<compile_context>
chip_gen: v6e
topology: v6e:2x2x1
jax: 0.10.0
libtpu: 0.0.40
codegen_flags: <defaults>
</compile_context>

<pallas_src>
import math
from functools import partial

import jax
import jax.numpy as jnp
import numpy as np
from jax import lax
from jax.experimental import pallas as pl
from jax.experimental.pallas import tpu as pltpu

# ----------------------------- configuration --------------------------------
DIM = 32
NUM_HEADS = 4
NUM_GROUPS = 2
HEAD_DIM = DIM // NUM_HEADS                 # 8
HPG = NUM_HEADS // NUM_GROUPS               # heads per group = 2
KV_DIM = HEAD_DIM * NUM_GROUPS              # 16
SOFTMAX_SCALE = 1.0 / math.sqrt(HEAD_DIM)
LN_EPS = 1e-5

assert HEAD_DIM & (HEAD_DIM - 1) == 0, "HEAD_DIM must be a power of two (shift trick)"
_HEAD_SHIFT = HEAD_DIM.bit_length() - 1

# contract the last dim of x with the last dim of w  ==  x @ w.T  (torch Linear)
_DN_NT = (((1,), (1,)), ((), ()))


# ----------------------------- in-kernel helpers -----------------------------
def _blockdiag_avg(n):
    """(n, n) matrix: 1/HEAD_DIM inside each HEAD_DIM x HEAD_DIM diagonal block."""
    r = lax.broadcasted_iota(jnp.int32, (n, n), 0)
    c = lax.broadcasted_iota(jnp.int32, (n, n), 1)
    same_head = (r >> _HEAD_SHIFT) == (c >> _HEAD_SHIFT)
    return jnp.where(same_head, 1.0 / HEAD_DIM, 0.0).astype(jnp.float32)


def _layer_norm_heads(x, gamma, beta):
    """Per-head LayerNorm on a lane-dense (rows, n_heads*HEAD_DIM) layout.

    Per-head mean / variance are computed with block-diagonal averaging matmuls
    so no reshape/transpose of the activation is needed.
    """
    avg = _blockdiag_avg(x.shape[-1])
    mu = jnp.dot(x, avg, preferred_element_type=jnp.float32)
    xc = x - mu
    var = jnp.dot(xc * xc, avg, preferred_element_type=jnp.float32)
    return xc * lax.rsqrt(var + LN_EPS) * gamma + beta


# --------------------------- fused forward kernel ----------------------------
def _make_fused_kernel(has_mask: bool):
    def kernel(*refs):
        if has_mask:
            (q_ref, k_ref, v_ref, bias_ref,
             wq_ref, bq_ref, wk_ref, bk_ref, wv_ref, bv_ref, wo_ref, bo_ref,
             qnw_ref, qnb_ref, knw_ref, knb_ref, o_ref) = refs
        else:
            (q_ref, k_ref, v_ref,
             wq_ref, bq_ref, wk_ref, bk_ref, wv_ref, bv_ref, wo_ref, bo_ref,
             qnw_ref, qnb_ref, knw_ref, knb_ref, o_ref) = refs
            bias_ref = None

        xq = q_ref[0].astype(jnp.float32)            # (Lq, DIM)
        xk = k_ref[0].astype(jnp.float32)            # (Lk, DIM)
        xv = v_ref[0].astype(jnp.float32)            # (Lk, DIM)
        Lq = xq.shape[0]

        # ---- projections (torch weights (out, in): NT dot, no transposes) ----
        q = lax.dot_general(xq, wq_ref[...], _DN_NT,
                            preferred_element_type=jnp.float32) + bq_ref[...]   # (Lq, DIM)
        k = lax.dot_general(xk, wk_ref[...], _DN_NT,
                            preferred_element_type=jnp.float32) + bk_ref[...]   # (Lk, KV_DIM)
        v = lax.dot_general(xv, wv_ref[...], _DN_NT,
                            preferred_element_type=jnp.float32) + bv_ref[...]   # (Lk, KV_DIM)

        # ---- per-head / per-group LayerNorm, lane-dense -----------------------
        q_gamma = jnp.concatenate([qnw_ref[...]] * NUM_HEADS, axis=1)   # (1, DIM)
        q_beta = jnp.concatenate([qnb_ref[...]] * NUM_HEADS, axis=1)
        k_gamma = jnp.concatenate([knw_ref[...]] * NUM_GROUPS, axis=1)  # (1, KV_DIM)
        k_beta = jnp.concatenate([knb_ref[...]] * NUM_GROUPS, axis=1)
        q = _layer_norm_heads(q, q_gamma, q_beta)
        k = _layer_norm_heads(k, k_gamma, k_beta)

        if has_mask:
            bias = bias_ref[0].astype(jnp.float32)                  # (Lq, Lk)
            bias_g = jnp.concatenate([bias] * HPG, axis=0)          # (HPG*Lq, Lk)

        # ---- grouped attention: HPG heads stacked along the M axis ------------
        head_outs = []
        for g in range(NUM_GROUPS):
            kg = k[:, g * HEAD_DIM:(g + 1) * HEAD_DIM]              # (Lk, Dh)
            vg = v[:, g * HEAD_DIM:(g + 1) * HEAD_DIM]              # (Lk, Dh)
            qg = jnp.concatenate(
                [q[:, (g * HPG + j) * HEAD_DIM:(g * HPG + j + 1) * HEAD_DIM]
                 for j in range(HPG)], axis=0)                      # (HPG*Lq, Dh)

            scores = lax.dot_general(qg, kg, _DN_NT,
                                     preferred_element_type=jnp.float32)
            scores = scores * SOFTMAX_SCALE
            if has_mask:
                scores = scores + bias_g
            m = jnp.max(scores, axis=-1, keepdims=True)
            p = jnp.exp(scores - m)
            attn = p * pl.reciprocal(jnp.sum(p, axis=-1, keepdims=True), approx=True)
            og = jnp.dot(attn, vg, preferred_element_type=jnp.float32)  # (HPG*Lq, Dh)
            for j in range(HPG):
                head_outs.append(og[j * Lq:(j + 1) * Lq, :])

        # heads re-concatenated along lanes: (Lq, DIM), lane-dense store
        attn_out = jnp.concatenate(head_outs, axis=1)
        out = lax.dot_general(attn_out, wo_ref[...], _DN_NT,
                              preferred_element_type=jnp.float32) + bo_ref[...]
        o_ref[0] = out.astype(o_ref.dtype)

    return kernel


# ------------------------------- forward -------------------------------------
def gqa_forward(params, query, key, value, attn_mask=None):
    """Pallas implementation of GroupedQueryAttention.forward.

    query: (B, q_len, dim); key/value: (B, kv_len, dim)
    attn_mask: optional bool (B, q_len, kv_len); True = attend.
    """
    B, Lq, D = query.shape
    Lk = key.shape[1]
    has_mask = attn_mask is not None

    in_specs = [
        pl.BlockSpec((1, Lq, D), lambda b: (b, 0, 0)),
        pl.BlockSpec((1, Lk, D), lambda b: (b, 0, 0)),
        pl.BlockSpec((1, Lk, D), lambda b: (b, 0, 0)),
    ]
    args = [query, key, value]

    if has_mask:
        # additive bias built only when a mask is supplied (no zero-bias DMA)
        bias = jnp.where(attn_mask, 0.0, -1e30).astype(jnp.float32)
        in_specs.append(pl.BlockSpec((1, Lq, Lk), lambda b: (b, 0, 0)))
        args.append(bias)

    wparams = [
        params["wq"], params["bq"].reshape(1, -1),
        params["wk"], params["bk"].reshape(1, -1),
        params["wv"], params["bv"].reshape(1, -1),
        params["wo"], params["bo"].reshape(1, -1),
        params["q_norm_w"].reshape(1, -1), params["q_norm_b"].reshape(1, -1),
        params["k_norm_w"].reshape(1, -1), params["k_norm_b"].reshape(1, -1),
    ]
    for w in wparams:
        in_specs.append(pl.BlockSpec(w.shape, lambda b, _n=w.ndim: (0,) * _n))
    args.extend(wparams)

    out = pl.pallas_call(
        _make_fused_kernel(has_mask),
        out_shape=jax.ShapeDtypeStruct((B, Lq, D), query.dtype),
        grid=(B,),
        in_specs=in_specs,
        out_specs=pl.BlockSpec((1, Lq, D), lambda b: (b, 0, 0)),
        compiler_params=pltpu.CompilerParams(dimension_semantics=("parallel",)),
    )(*args)
    return out


# ------------------------------ pure-JAX reference ---------------------------
def gqa_reference(params, query, key, value, attn_mask=None):
    hp = jax.lax.Precision.HIGHEST
    B, Lq, D = query.shape
    Lk = key.shape[1]
    q = jnp.einsum("bld,od->blo", query, params["wq"], precision=hp) + params["bq"]
    k = jnp.einsum("bld,od->blo", key, params["wk"], precision=hp) + params["bk"]
    v = jnp.einsum("bld,od->blo", value, params["wv"], precision=hp) + params["bv"]

    q = q.reshape(B, Lq, NUM_HEADS, HEAD_DIM).transpose(0, 2, 1, 3)
    k = k.reshape(B, Lk, NUM_GROUPS, HEAD_DIM).transpose(0, 2, 1, 3)
    v = v.reshape(B, Lk, NUM_GROUPS, HEAD_DIM).transpose(0, 2, 1, 3)

    def ln(x, w, b):
        mu = jnp.mean(x, axis=-1, keepdims=True)
        var = jnp.mean((x - mu) ** 2, axis=-1, keepdims=True)
        return (x - mu) * jax.lax.rsqrt(var + LN_EPS) * w + b

    q = ln(q, params["q_norm_w"], params["q_norm_b"])
    k = ln(k, params["k_norm_w"], params["k_norm_b"])

    k = jnp.repeat(k, HPG, axis=1)   # (B,H,Lk,Dh), head h -> group h//HPG
    v = jnp.repeat(v, HPG, axis=1)

    scores = jnp.einsum("bhqd,bhkd->bhqk", q, k, precision=hp) * SOFTMAX_SCALE
    if attn_mask is not None:
        scores = scores + jnp.where(attn_mask, 0.0, -1e30)[:, None, :, :]
    attn = jax.nn.softmax(scores, axis=-1)
    out = jnp.einsum("bhqk,bhkd->bhqd", attn, v, precision=hp)
    out = out.transpose(0, 2, 1, 3).reshape(B, Lq, D)
    out = jnp.einsum("bld,od->blo", out, params["wo"], precision=hp) + params["bo"]
    return out


# --------------------------------- main --------------------------------------
def init_params(key):
    ks = jax.random.split(key, 10)
    p = {
        "wq": 0.05 * jax.random.normal(ks[0], (DIM, DIM), jnp.float32),
        "bq": 0.05 * jax.random.normal(ks[1], (DIM,), jnp.float32),
        "wk": 0.05 * jax.random.normal(ks[2], (KV_DIM, DIM), jnp.float32),
        "bk": 0.05 * jax.random.normal(ks[3], (KV_DIM,), jnp.float32),
        "wv": 0.05 * jax.random.normal(ks[4], (KV_DIM, DIM), jnp.float32),
        "bv": 0.05 * jax.random.normal(ks[5], (KV_DIM,), jnp.float32),
        "wo": 0.05 * jax.random.normal(ks[6], (DIM, DIM), jnp.float32),
        "bo": 0.05 * jax.random.normal(ks[7], (DIM,), jnp.float32),
        # LayerNorm affine params (perturbed from the torch default 1/0)
        "q_norm_w": 1.0 + 0.1 * jax.random.normal(ks[8], (HEAD_DIM,), jnp.float32),
        "q_norm_b": 0.05 * jax.random.normal(ks[9], (HEAD_DIM,), jnp.float32),
        "k_norm_w": jnp.ones((HEAD_DIM,), jnp.float32),
        "k_norm_b": jnp.zeros((HEAD_DIM,), jnp.float32),
    }
    return p


if __name__ == "__main__":
    root = jax.random.PRNGKey(0)
    k_params, k_q, k_k, k_v = jax.random.split(root, 4)

    B, Lq, Lk = 2, 8, 8
    params = init_params(k_params)
    query = jax.random.normal(k_q, (B, Lq, DIM), jnp.float32)
    key_in = jax.random.normal(k_k, (B, Lk, DIM), jnp.float32)
    value = jax.random.normal(k_v, (B, Lk, DIM), jnp.float32)

    # boolean mask: batch 1 cannot attend to the last kv position
    attn_mask = jnp.ones((B, Lq, Lk), dtype=bool)
    attn_mask = attn_mask.at[1, :, Lk - 1].set(False)

    # masked path
    out = jax.block_until_ready(gqa_forward(params, query, key_in, value, attn_mask))
    ref = jax.block_until_ready(gqa_reference(params, query, key_in, value, attn_mask))
    np.testing.assert_allclose(np.asarray(out), np.asarray(ref), rtol=2e-3, atol=2e-3)

    # no-mask path (specialised kernel without the bias input / add)
    out_nm = jax.block_until_ready(gqa_forward(params, query, key_in, value, None))
    ref_nm = jax.block_until_ready(gqa_reference(params, query, key_in, value, None))
    np.testing.assert_allclose(np.asarray(out_nm), np.asarray(ref_nm), rtol=2e-3, atol=2e-3)

    print("KERNEL_OK")
</pallas_src>

<mosaic_0001>
module attributes {stable_mosaic.version = 11 : i64} {
  func.func @kernel(%arg0: i32, %arg1: memref<1x8x32xf32, #tpu.memory_space<vmem>>, %arg2: memref<1x8x32xf32, #tpu.memory_space<vmem>>, %arg3: memref<1x8x32xf32, #tpu.memory_space<vmem>>, %arg4: memref<1x8x8xf32, #tpu.memory_space<vmem>>, %arg5: memref<32x32xf32, #tpu.memory_space<vmem>>, %arg6: memref<1x32xf32, #tpu.memory_space<vmem>>, %arg7: memref<16x32xf32, #tpu.memory_space<vmem>>, %arg8: memref<1x16xf32, #tpu.memory_space<vmem>>, %arg9: memref<16x32xf32, #tpu.memory_space<vmem>>, %arg10: memref<1x16xf32, #tpu.memory_space<vmem>>, %arg11: memref<32x32xf32, #tpu.memory_space<vmem>>, %arg12: memref<1x32xf32, #tpu.memory_space<vmem>>, %arg13: memref<1x8xf32, #tpu.memory_space<vmem>>, %arg14: memref<1x8xf32, #tpu.memory_space<vmem>>, %arg15: memref<1x8xf32, #tpu.memory_space<vmem>>, %arg16: memref<1x8xf32, #tpu.memory_space<vmem>>, %arg17: memref<1x8x32xf32, #tpu.memory_space<vmem>>) attributes {dimension_semantics = [#tpu.dimension_semantics<parallel>], iteration_bounds = array<i64: 2>, scalar_prefetch = 0 : i64, scratch_operands = 0 : i64, tpu.core_type = #tpu.core_type<tc>, window_params = [{transform_indices = @transform_0, window_bounds = array<i64: 1, 8, 32>}, {transform_indices = @transform_1, window_bounds = array<i64: 1, 8, 32>}, {transform_indices = @transform_2, window_bounds = array<i64: 1, 8, 32>}, {transform_indices = @transform_3, window_bounds = array<i64: 1, 8, 8>}, {pipeline_mode = #tpu.pipeline_mode<synchronous>, transform_indices = @transform_4, window_bounds = array<i64: 32, 32>}, {pipeline_mode = #tpu.pipeline_mode<synchronous>, transform_indices = @transform_5, window_bounds = array<i64: 1, 32>}, {pipeline_mode = #tpu.pipeline_mode<synchronous>, transform_indices = @transform_6, window_bounds = array<i64: 16, 32>}, {pipeline_mode = #tpu.pipeline_mode<synchronous>, transform_indices = @transform_7, window_bounds = array<i64: 1, 16>}, {pipeline_mode = #tpu.pipeline_mode<synchronous>, transform_indices = @transform_8, window_bounds = array<i64: 16, 32>}, {pipeline_mode = #tpu.pipeline_mode<synchronous>, transform_indices = @transform_9, window_bounds = array<i64: 1, 16>}, {pipeline_mode = #tpu.pipeline_mode<synchronous>, transform_indices = @transform_10, window_bounds = array<i64: 32, 32>}, {pipeline_mode = #tpu.pipeline_mode<synchronous>, transform_indices = @transform_11, window_bounds = array<i64: 1, 32>}, {pipeline_mode = #tpu.pipeline_mode<synchronous>, transform_indices = @transform_12, window_bounds = array<i64: 1, 8>}, {pipeline_mode = #tpu.pipeline_mode<synchronous>, transform_indices = @transform_13, window_bounds = array<i64: 1, 8>}, {pipeline_mode = #tpu.pipeline_mode<synchronous>, transform_indices = @transform_14, window_bounds = array<i64: 1, 8>}, {pipeline_mode = #tpu.pipeline_mode<synchronous>, transform_indices = @transform_15, window_bounds = array<i64: 1, 8>}, {transform_indices = @transform_16, window_bounds = array<i64: 1, 8, 32>}]} {
    %c0 = arith.constant 0 : index
    %c0_0 = arith.constant 0 : index
    %c0_1 = arith.constant 0 : index
    %0 = vector.load %arg1[%c0, %c0_0, %c0_1] : memref<1x8x32xf32, #tpu.memory_space<vmem>>, vector<1x8x32xf32>
    %1 = vector.shape_cast %0 : vector<1x8x32xf32> to vector<8x32xf32>
    %c0_2 = arith.constant 0 : index
    %c0_3 = arith.constant 0 : index
    %c0_4 = arith.constant 0 : index
    %2 = vector.load %arg2[%c0_2, %c0_3, %c0_4] : memref<1x8x32xf32, #tpu.memory_space<vmem>>, vector<1x8x32xf32>
    %3 = vector.shape_cast %2 : vector<1x8x32xf32> to vector<8x32xf32>
    %c0_5 = arith.constant 0 : index
    %c0_6 = arith.constant 0 : index
    %c0_7 = arith.constant 0 : index
    %4 = vector.load %arg3[%c0_5, %c0_6, %c0_7] : memref<1x8x32xf32, #tpu.memory_space<vmem>>, vector<1x8x32xf32>
    %5 = vector.shape_cast %4 : vector<1x8x32xf32> to vector<8x32xf32>
    %c0_8 = arith.constant 0 : index
    %c0_9 = arith.constant 0 : index
    %6 = vector.load %arg5[%c0_8, %c0_9] : memref<32x32xf32, #tpu.memory_space<vmem>>, vector<32x32xf32>
    %cst = arith.constant dense<0.000000e+00> : vector<8x32xf32>
    %7 = tpu.matmul %1, %6, %cst {dimension_numbers = #tpu.dot_dimension_numbers<[1], [1], [0], [0], [0, 0, 1, 0], [], []>} : vector<8x32xf32>, vector<32x32xf32>, vector<8x32xf32> -> vector<8x32xf32>
    %c0_10 = arith.constant 0 : index
    %c0_11 = arith.constant 0 : index
    %8 = vector.load %arg6[%c0_10, %c0_11] : memref<1x32xf32, #tpu.memory_space<vmem>>, vector<1x32xf32>
    %9 = vector.broadcast %8 : vector<1x32xf32> to vector<8x32xf32>
    %10 = arith.addf %7, %9 : vector<8x32xf32>
    %c0_12 = arith.constant 0 : index
    %c0_13 = arith.constant 0 : index
    %11 = vector.load %arg7[%c0_12, %c0_13] : memref<16x32xf32, #tpu.memory_space<vmem>>, vector<16x32xf32>
    %cst_14 = arith.constant dense<0.000000e+00> : vector<8x16xf32>
    %12 = tpu.matmul %3, %11, %cst_14 {dimension_numbers = #tpu.dot_dimension_numbers<[1], [1], [0], [0], [0, 0, 1, 0], [], []>} : vector<8x32xf32>, vector<16x32xf32>, vector<8x16xf32> -> vector<8x16xf32>
    %c0_15 = arith.constant 0 : index
    %c0_16 = arith.constant 0 : index
    %13 = vector.load %arg8[%c0_15, %c0_16] : memref<1x16xf32, #tpu.memory_space<vmem>>, vector<1x16xf32>
    %14 = vector.broadcast %13 : vector<1x16xf32> to vector<8x16xf32>
    %15 = arith.addf %12, %14 : vector<8x16xf32>
    %c0_17 = arith.constant 0 : index
    %c0_18 = arith.constant 0 : index
    %16 = vector.load %arg9[%c0_17, %c0_18] : memref<16x32xf32, #tpu.memory_space<vmem>>, vector<16x32xf32>
    %cst_19 = arith.constant dense<0.000000e+00> : vector<8x16xf32>
    %17 = tpu.matmul %5, %16, %cst_19 {dimension_numbers = #tpu.dot_dimension_numbers<[1], [1], [0], [0], [0, 0, 1, 0], [], []>} : vector<8x32xf32>, vector<16x32xf32>, vector<8x16xf32> -> vector<8x16xf32>
    %c0_20 = arith.constant 0 : index
    %c0_21 = arith.constant 0 : index
    %18 = vector.load %arg10[%c0_20, %c0_21] : memref<1x16xf32, #tpu.memory_space<vmem>>, vector<1x16xf32>
    %19 = vector.broadcast %18 : vector<1x16xf32> to vector<8x16xf32>
    %20 = arith.addf %17, %19 : vector<8x16xf32>
    %c0_22 = arith.constant 0 : index
    %c0_23 = arith.constant 0 : index
    %21 = vector.load %arg13[%c0_22, %c0_23] : memref<1x8xf32, #tpu.memory_space<vmem>>, vector<1x8xf32>
    %22 = tpu.concatenate %21, %21, %21, %21 in 1 : vector<1x8xf32>, vector<1x8xf32>, vector<1x8xf32>, vector<1x8xf32> -> vector<1x32xf32>
    %c0_24 = arith.constant 0 : index
    %c0_25 = arith.constant 0 : index
    %23 = vector.load %arg14[%c0_24, %c0_25] : memref<1x8xf32, #tpu.memory_space<vmem>>, vector<1x8xf32>
    %24 = tpu.concatenate %23, %23, %23, %23 in 1 : vector<1x8xf32>, vector<1x8xf32>, vector<1x8xf32>, vector<1x8xf32> -> vector<1x32xf32>
    %c0_26 = arith.constant 0 : index
    %c0_27 = arith.constant 0 : index
    %25 = vector.load %arg15[%c0_26, %c0_27] : memref<1x8xf32, #tpu.memory_space<vmem>>, vector<1x8xf32>
    %26 = tpu.concatenate %25, %25 in 1 : vector<1x8xf32>, vector<1x8xf32> -> vector<1x16xf32>
    %c0_28 = arith.constant 0 : index
    %c0_29 = arith.constant 0 : index
    %27 = vector.load %arg16[%c0_28, %c0_29] : memref<1x8xf32, #tpu.memory_space<vmem>>, vector<1x8xf32>
    %28 = tpu.concatenate %27, %27 in 1 : vector<1x8xf32>, vector<1x8xf32> -> vector<1x16xf32>
    %29 = tpu.iota {dimensions = array<i32: 0>} : vector<32x32xi32>
    %30 = tpu.iota {dimensions = array<i32: 1>} : vector<32x32xi32>
    %c3_i32 = arith.constant 3 : i32
    %31 = vector.broadcast %c3_i32 : i32 to vector<32x32xi32>
    %32 = arith.shrsi %29, %31 : vector<32x32xi32>
    %c3_i32_30 = arith.constant 3 : i32
    %33 = vector.broadcast %c3_i32_30 : i32 to vector<32x32xi32>
    %34 = arith.shrsi %30, %33 : vector<32x32xi32>
    %35 = arith.cmpi eq, %32, %34 : vector<32x32xi32>
    %cst_31 = arith.constant 1.250000e-01 : f32
    %cst_32 = arith.constant 0.000000e+00 : f32
    %36 = vector.broadcast %cst_31 : f32 to vector<32x32xf32>
    %37 = vector.broadcast %cst_32 : f32 to vector<32x32xf32>
    %38 = arith.select %35, %36, %37 : vector<32x32xi1>, vector<32x32xf32>
    %cst_33 = arith.constant dense<0.000000e+00> : vector<8x32xf32>
    %39 = tpu.matmul %10, %38, %cst_33 {dimension_numbers = #tpu.dot_dimension_numbers<[1], [0], [0], [1], [0, 0, 1, 1], [], []>} : vector<8x32xf32>, vector<32x32xf32>, vector<8x32xf32> -> vector<8x32xf32>
    %40 = arith.subf %10, %39 : vector<8x32xf32>
    %41 = arith.mulf %40, %40 : vector<8x32xf32>
    %cst_34 = arith.constant dense<0.000000e+00> : vector<8x32xf32>
    %42 = tpu.matmul %41, %38, %cst_34 {dimension_numbers = #tpu.dot_dimension_numbers<[1], [0], [0], [1], [0, 0, 1, 1], [], []>} : vector<8x32xf32>, vector<32x32xf32>, vector<8x32xf32> -> vector<8x32xf32>
    %cst_35 = arith.constant 9.99999974E-6 : f32
    %43 = vector.broadcast %cst_35 : f32 to vector<8x32xf32>
    %44 = arith.addf %42, %43 : vector<8x32xf32>
    %45 = math.rsqrt %44 : vector<8x32xf32>
    %46 = arith.mulf %40, %45 : vector<8x32xf32>
    %47 = vector.broadcast %22 : vector<1x32xf32> to vector<8x32xf32>
    %48 = arith.mulf %46, %47 : vector<8x32xf32>
    %49 = vector.broadcast %24 : vector<1x32xf32> to vector<8x32xf32>
    %50 = arith.addf %48, %49 : vector<8x32xf32>
    %51 = tpu.iota {dimensions = array<i32: 0>} : vector<16x16xi32>
    %52 = tpu.iota {dimensions = array<i32: 1>} : vector<16x16xi32>
    %c3_i32_36 = arith.constant 3 : i32
    %53 = vector.broadcast %c3_i32_36 : i32 to vector<16x16xi32>
    %54 = arith.shrsi %51, %53 : vector<16x16xi32>
    %c3_i32_37 = arith.constant 3 : i32
    %55 = vector.broadcast %c3_i32_37 : i32 to vector<16x16xi32>
    %56 = arith.shrsi %52, %55 : vector<16x16xi32>
    %57 = arith.cmpi eq, %54, %56 : vector<16x16xi32>
    %cst_38 = arith.constant 1.250000e-01 : f32
    %cst_39 = arith.constant 0.000000e+00 : f32
    %58 = vector.broadcast %cst_38 : f32 to vector<16x16xf32>
    %59 = vector.broadcast %cst_39 : f32 to vector<16x16xf32>
    %60 = arith.select %57, %58, %59 : vector<16x16xi1>, vector<16x16xf32>
    %cst_40 = arith.constant dense<0.000000e+00> : vector<8x16xf32>
    %61 = tpu.matmul %15, %60, %cst_40 {dimension_numbers = #tpu.dot_dimension_numbers<[1], [0], [0], [1], [0, 0, 1, 1], [], []>} : vector<8x16xf32>, vector<16x16xf32>, vector<8x16xf32> -> vector<8x16xf32>
    %62 = arith.subf %15, %61 : vector<8x16xf32>
    %63 = arith.mulf %62, %62 : vector<8x16xf32>
    %cst_41 = arith.constant dense<0.000000e+00> : vector<8x16xf32>
    %64 = tpu.matmul %63, %60, %cst_41 {dimension_numbers = #tpu.dot_dimension_numbers<[1], [0], [0], [1], [0, 0, 1, 1], [], []>} : vector<8x16xf32>, vector<16x16xf32>, vector<8x16xf32> -> vector<8x16xf32>
    %cst_42 = arith.constant 9.99999974E-6 : f32
    %65 = vector.broadcast %cst_42 : f32 to vector<8x16xf32>
    %66 = arith.addf %64, %65 : vector<8x16xf32>
    %67 = math.rsqrt %66 : vector<8x16xf32>
    %68 = arith.mulf %62, %67 : vector<8x16xf32>
    %69 = vector.broadcast %26 : vector<1x16xf32> to vector<8x16xf32>
    %70 = arith.mulf %68, %69 : vector<8x16xf32>
    %71 = vector.broadcast %28 : vector<1x16xf32> to vector<8x16xf32>
    %72 = arith.addf %70, %71 : vector<8x16xf32>
    %c0_43 = arith.constant 0 : index
    %c0_44 = arith.constant 0 : index
    %c0_45 = arith.constant 0 : index
    %73 = vector.load %arg4[%c0_43, %c0_44, %c0_45] : memref<1x8x8xf32, #tpu.memory_space<vmem>>, vector<1x8x8xf32>
    %74 = vector.shape_cast %73 : vector<1x8x8xf32> to vector<8x8xf32>
    %75 = tpu.concatenate %74, %74 in 0 : vector<8x8xf32>, vector<8x8xf32> -> vector<16x8xf32>
    %76 = vector.extract_strided_slice %72 {offsets = [0, 0], sizes = [8, 8], strides = [1, 1]} : vector<8x16xf32> to vector<8x8xf32>
    %77 = vector.extract_strided_slice %20 {offsets = [0, 0], sizes = [8, 8], strides = [1, 1]} : vector<8x16xf32> to vector<8x8xf32>
    %78 = vector.extract_strided_slice %50 {offsets = [0, 0], sizes = [8, 8], strides = [1, 1]} : vector<8x32xf32> to vector<8x8xf32>
    %79 = vector.extract_strided_slice %50 {offsets = [0, 8], sizes = [8, 8], strides = [1, 1]} : vector<8x32xf32> to vector<8x8xf32>
    %80 = tpu.concatenate %78, %79 in 0 : vector<8x8xf32>, vector<8x8xf32> -> vector<16x8xf32>
    %cst_46 = arith.constant dense<0.000000e+00> : vector<16x8xf32>
    %81 = tpu.matmul %80, %76, %cst_46 {dimension_numbers = #tpu.dot_dimension_numbers<[1], [1], [0], [0], [0, 0, 1, 0], [], []>} : vector<16x8xf32>, vector<8x8xf32>, vector<16x8xf32> -> vector<16x8xf32>
    %cst_47 = arith.constant 0.353553385 : f32
    %82 = vector.broadcast %cst_47 : f32 to vector<16x8xf32>
    %83 = arith.mulf %81, %82 : vector<16x8xf32>
    %84 = arith.addf %83, %75 : vector<16x8xf32>
    %cst_48 = arith.constant dense<0xFF800000> : vector<16xf32>
    %85 = vector.multi_reduction <maximumf>, %84, %cst_48 [1] : vector<16x8xf32> to vector<16xf32>
    %86 = vector.shape_cast %85 : vector<16xf32> to vector<16x1xf32>
    %87 = vector.broadcast %86 : vector<16x1xf32> to vector<16x8xf32>
    %88 = arith.subf %84, %87 : vector<16x8xf32>
    %89 = math.exp %88 : vector<16x8xf32>
    %cst_49 = arith.constant dense<0.000000e+00> : vector<16xf32>
    %90 = vector.multi_reduction <add>, %89, %cst_49 [1] : vector<16x8xf32> to vector<16xf32>
    %91 = vector.shape_cast %90 : vector<16xf32> to vector<16x1xf32>
    %92 = tpu.reciprocal %91 {approx = true} : vector<16x1xf32> -> vector<16x1xf32>
    %93 = vector.broadcast %92 : vector<16x1xf32> to vector<16x8xf32>
    %94 = arith.mulf %89, %93 : vector<16x8xf32>
    %cst_50 = arith.constant dense<0.000000e+00> : vector<16x8xf32>
    %95 = tpu.matmul %94, %77, %cst_50 {dimension_numbers = #tpu.dot_dimension_numbers<[1], [0], [0], [1], [0, 0, 1, 1], [], []>} : vector<16x8xf32>, vector<8x8xf32>, vector<16x8xf32> -> vector<16x8xf32>
    %96 = vector.extract_strided_slice %95 {offsets = [0, 0], sizes = [8, 8], strides = [1, 1]} : vector<16x8xf32> to vector<8x8xf32>
    %97 = vector.extract_strided_slice %95 {offsets = [8, 0], sizes = [8, 8], strides = [1, 1]} : vector<16x8xf32> to vector<8x8xf32>
    %98 = vector.extract_strided_slice %72 {offsets = [0, 8], sizes = [8, 8], strides = [1, 1]} : vector<8x16xf32> to vector<8x8xf32>
    %99 = vector.extract_strided_slice %20 {offsets = [0, 8], sizes = [8, 8], strides = [1, 1]} : vector<8x16xf32> to vector<8x8xf32>
    %100 = vector.extract_strided_slice %50 {offsets = [0, 16], sizes = [8, 8], strides = [1, 1]} : vector<8x32xf32> to vector<8x8xf32>
    %101 = vector.extract_strided_slice %50 {offsets = [0, 24], sizes = [8, 8], strides = [1, 1]} : vector<8x32xf32> to vector<8x8xf32>
    %102 = tpu.concatenate %100, %101 in 0 : vector<8x8xf32>, vector<8x8xf32> -> vector<16x8xf32>
    %cst_51 = arith.constant dense<0.000000e+00> : vector<16x8xf32>
    %103 = tpu.matmul %102, %98, %cst_51 {dimension_numbers = #tpu.dot_dimension_numbers<[1], [1], [0], [0], [0, 0, 1, 0], [], []>} : vector<16x8xf32>, vector<8x8xf32>, vector<16x8xf32> -> vector<16x8xf32>
    %cst_52 = arith.constant 0.353553385 : f32
    %104 = vector.broadcast %cst_52 : f32 to vector<16x8xf32>
    %105 = arith.mulf %103, %104 : vector<16x8xf32>
    %106 = arith.addf %105, %75 : vector<16x8xf32>
    %cst_53 = arith.constant dense<0xFF800000> : vector<16xf32>
    %107 = vector.multi_reduction <maximumf>, %106, %cst_53 [1] : vector<16x8xf32> to vector<16xf32>
    %108 = vector.shape_cast %107 : vector<16xf32> to vector<16x1xf32>
    %109 = vector.broadcast %108 : vector<16x1xf32> to vector<16x8xf32>
    %110 = arith.subf %106, %109 : vector<16x8xf32>
    %111 = math.exp %110 : vector<16x8xf32>
    %cst_54 = arith.constant dense<0.000000e+00> : vector<16xf32>
    %112 = vector.multi_reduction <add>, %111, %cst_54 [1] : vector<16x8xf32> to vector<16xf32>
    %113 = vector.shape_cast %112 : vector<16xf32> to vector<16x1xf32>
    %114 = tpu.reciprocal %113 {approx = true} : vector<16x1xf32> -> vector<16x1xf32>
    %115 = vector.broadcast %114 : vector<16x1xf32> to vector<16x8xf32>
    %116 = arith.mulf %111, %115 : vector<16x8xf32>
    %cst_55 = arith.constant dense<0.000000e+00> : vector<16x8xf32>
    %117 = tpu.matmul %116, %99, %cst_55 {dimension_numbers = #tpu.dot_dimension_numbers<[1], [0], [0], [1], [0, 0, 1, 1], [], []>} : vector<16x8xf32>, vector<8x8xf32>, vector<16x8xf32> -> vector<16x8xf32>
    %118 = vector.extract_strided_slice %117 {offsets = [0, 0], sizes = [8, 8], strides = [1, 1]} : vector<16x8xf32> to vector<8x8xf32>
    %119 = vector.extract_strided_slice %117 {offsets = [8, 0], sizes = [8, 8], strides = [1, 1]} : vector<16x8xf32> to vector<8x8xf32>
    %120 = tpu.concatenate %96, %97, %118, %119 in 1 : vector<8x8xf32>, vector<8x8xf32>, vector<8x8xf32>, vector<8x8xf32> -> vector<8x32xf32>
    %c0_56 = arith.constant 0 : index
    %c0_57 = arith.constant 0 : index
    %121 = vector.load %arg11[%c0_56, %c0_57] : memref<32x32xf32, #tpu.memory_space<vmem>>, vector<32x32xf32>
    %cst_58 = arith.constant dense<0.000000e+00> : vector<8x32xf32>
    %122 = tpu.matmul %120, %121, %cst_58 {dimension_numbers = #tpu.dot_dimension_numbers<[1], [1], [0], [0], [0, 0, 1, 0], [], []>} : vector<8x32xf32>, vector<32x32xf32>, vector<8x32xf32> -> vector<8x32xf32>
    %c0_59 = arith.constant 0 : index
    %c0_60 = arith.constant 0 : index
    %123 = vector.load %arg12[%c0_59, %c0_60] : memref<1x32xf32, #tpu.memory_space<vmem>>, vector<1x32xf32>
    %124 = vector.broadcast %123 : vector<1x32xf32> to vector<8x32xf32>
    %125 = arith.addf %122, %124 : vector<8x32xf32>
    %c0_61 = arith.constant 0 : index
    %c0_62 = arith.constant 0 : index
    %c0_63 = arith.constant 0 : index
    %126 = vector.load %arg17[%c0_61, %c0_62, %c0_63] : memref<1x8x32xf32, #tpu.memory_space<vmem>>, vector<1x8x32xf32>
    %127 = vector.shape_cast %126 : vector<1x8x32xf32> to vector<8x32xf32>
    %128 = vector.shape_cast %125 : vector<8x32xf32> to vector<1x8x32xf32>
    tpu.vector_store %arg17[%c0_61, %c0_62, %c0_63], %128 {strides = array<i32>} : memref<1x8x32xf32, #tpu.memory_space<vmem>>, vector<1x8x32xf32>,
    return
  }
  func.func @transform_0(%arg0: i32) -> (i32, i32, i32) {
    %c0_i32 = arith.constant 0 : i32
    %c0_i32_0 = arith.constant 0 : i32
    %c0_i32_1 = arith.constant 0 : i32
    return %arg0, %c0_i32, %c0_i32_0 : i32, i32, i32
  }
  func.func @transform_1(%arg0: i32) -> (i32, i32, i32) {
    %c0_i32 = arith.constant 0 : i32
    %c0_i32_0 = arith.constant 0 : i32
    %c0_i32_1 = arith.constant 0 : i32
    return %arg0, %c0_i32, %c0_i32_0 : i32, i32, i32
  }
  func.func @transform_2(%arg0: i32) -> (i32, i32, i32) {
    %c0_i32 = arith.constant 0 : i32
    %c0_i32_0 = arith.constant 0 : i32
    %c0_i32_1 = arith.constant 0 : i32
    return %arg0, %c0_i32, %c0_i32_0 : i32, i32, i32
  }
  func.func @transform_3(%arg0: i32) -> (i32, i32, i32) {
    %c0_i32 = arith.constant 0 : i32
    %c0_i32_0 = arith.constant 0 : i32
    %c0_i32_1 = arith.constant 0 : i32
    return %arg0, %c0_i32, %c0_i32_0 : i32, i32, i32
  }
  func.func @transform_4(%arg0: i32) -> (i32, i32) {
    %c0_i32 = arith.constant 0 : i32
    %c0_i32_0 = arith.constant 0 : i32
    %c0_i32_1 = arith.constant 0 : i32
    return %c0_i32, %c0_i32_0 : i32, i32
  }
  func.func @transform_5(%arg0: i32) -> (i32, i32) {
    %c0_i32 = arith.constant 0 : i32
    %c0_i32_0 = arith.constant 0 : i32
    %c0_i32_1 = arith.constant 0 : i32
    return %c0_i32, %c0_i32_0 : i32, i32
  }
  func.func @transform_6(%arg0: i32) -> (i32, i32) {
    %c0_i32 = arith.constant 0 : i32
    %c0_i32_0 = arith.constant 0 : i32
    %c0_i32_1 = arith.constant 0 : i32
    return %c0_i32, %c0_i32_0 : i32, i32
  }
  func.func @transform_7(%arg0: i32) -> (i32, i32) {
    %c0_i32 = arith.constant 0 : i32
    %c0_i32_0 = arith.constant 0 : i32
    %c0_i32_1 = arith.constant 0 : i32
    return %c0_i32, %c0_i32_0 : i32, i32
  }
  func.func @transform_8(%arg0: i32) -> (i32, i32) {
    %c0_i32 = arith.constant 0 : i32
    %c0_i32_0 = arith.constant 0 : i32
    %c0_i32_1 = arith.constant 0 : i32
    return %c0_i32, %c0_i32_0 : i32, i32
  }
  func.func @transform_9(%arg0: i32) -> (i32, i32) {
    %c0_i32 = arith.constant 0 : i32
    %c0_i32_0 = arith.constant 0 : i32
    %c0_i32_1 = arith.constant 0 : i32
    return %c0_i32, %c0_i32_0 : i32, i32
  }
  func.func @transform_10(%arg0: i32) -> (i32, i32) {
    %c0_i32 = arith.constant 0 : i32
    %c0_i32_0 = arith.constant 0 : i32
    %c0_i32_1 = arith.constant 0 : i32
    return %c0_i32, %c0_i32_0 : i32, i32
  }
  func.func @transform_11(%arg0: i32) -> (i32, i32) {
    %c0_i32 = arith.constant 0 : i32
    %c0_i32_0 = arith.constant 0 : i32
    %c0_i32_1 = arith.constant 0 : i32
    return %c0_i32, %c0_i32_0 : i32, i32
  }
  func.func @transform_12(%arg0: i32) -> (i32, i32) {
    %c0_i32 = arith.constant 0 : i32
    %c0_i32_0 = arith.constant 0 : i32
    %c0_i32_1 = arith.constant 0 : i32
    return %c0_i32, %c0_i32_0 : i32, i32
  }
  func.func @transform_13(%arg0: i32) -> (i32, i32) {
    %c0_i32 = arith.constant 0 : i32
    %c0_i32_0 = arith.constant 0 : i32
    %c0_i32_1 = arith.constant 0 : i32
    return %c0_i32, %c0_i32_0 : i32, i32
  }
  func.func @transform_14(%arg0: i32) -> (i32, i32) {
    %c0_i32 = arith.constant 0 : i32
    %c0_i32_0 = arith.constant 0 : i32
    %c0_i32_1 = arith.constant 0 : i32
    return %c0_i32, %c0_i32_0 : i32, i32
  }
  func.func @transform_15(%arg0: i32) -> (i32, i32) {
    %c0_i32 = arith.constant 0 : i32
    %c0_i32_0 = arith.constant 0 : i32
    %c0_i32_1 = arith.constant 0 : i32
    return %c0_i32, %c0_i32_0 : i32, i32
  }
  func.func @transform_16(%arg0: i32) -> (i32, i32, i32) {
    %c0_i32 = arith.constant 0 : i32
    %c0_i32_0 = arith.constant 0 : i32
    %c0_i32_1 = arith.constant 0 : i32
    return %arg0, %c0_i32, %c0_i32_0 : i32, i32, i32
  }
}

</mosaic_0001>

<bundles_post_ra>
// kernel: tpu_custom_call.1
= control target key start
LH: loop header
LB: loop body
LE: loop exit
PB: predicated region body
PF: predicated region fallthrough
CT: control target
= control target key end

     0   :  { %s3342_s0 = inlined_call_operand.hbm [shape: f32[2,8,32], index: 0, kind: input, shape index: {}]   ;;  %s3343_s1 = inlined_call_operand.hbm [shape: f32[2,8,32], index: 1, kind: input, shape index: {}]   ;;  %s3344_s2 = inlined_call_operand.hbm [shape: f32[2,8,32], index: 2, kind: input, shape index: {}]   ;;  %s3345_s3 = inlined_call_operand.hbm [shape: f32[2,8,8], index: 3, kind: input, shape index: {}]   ;;  %s3346_s4 = inlined_call_operand.hbm [shape: f32[32,32], index: 4, kind: input, shape index: {}]   ;;  %s3347_s5 = inlined_call_operand.vmem [shape: f32[1,32], index: 5, kind: input, shape index: {}]   ;;  %s3348_s6 = inlined_call_operand.hbm [shape: f32[16,32], index: 6, kind: input, shape index: {}]   ;;  %s3349_s7 = inlined_call_operand.vmem [shape: f32[1,16], index: 7, kind: input, shape index: {}]   ;;  %s3350_s8 = inlined_call_operand.hbm [shape: f32[16,32], index: 8, kind: input, shape index: {}]   ;;  %s3351_s9 = inlined_call_operand.vmem [shape: f32[1,16], index: 9, kind: input, shape index: {}]   ;;  %s3352_s10 = inlined_call_operand.hbm [shape: f32[32,32], index: 10, kind: input, shape index: {}]   ;;  %s3353_s11 = inlined_call_operand.vmem [shape: f32[1,32], index: 11, kind: input, shape index: {}]   ;;  %s3354_s12 = inlined_call_operand.vmem [shape: f32[1,8], index: 12, kind: input, shape index: {}]   ;;  %s3355_s13 = inlined_call_operand.vmem [shape: f32[1,8], index: 13, kind: input, shape index: {}]   ;;  %s3356_s14 = inlined_call_operand.vmem [shape: f32[1,8], index: 14, kind: input, shape index: {}]   ;;  %s3357_s15 = inlined_call_operand.vmem [shape: f32[1,8], index: 15, kind: input, shape index: {}]   ;;  %s3358_s16 = inlined_call_operand.hbm [shape: f32[2,8,32], index: 16, kind: output, shape index: {}]  }
   0x1   :  { %3380 = sst [smem:[#allocation29_spill]] %s3342_s0 }
   0x2   :  { %3381 = sst [smem:[#allocation30_spill]] %s3343_s1 }
   0x3   :  { %3382 = sst [smem:[#allocation31_spill]] %s3346_s4 }
   0x4   :  { %3383 = sst [smem:[#allocation32_spill]] %s3348_s6 }
   0x5   :  { %3384 = sst [smem:[#allocation33_spill]] %s3350_s8 }
   0x6   :  { %3385 = sst [smem:[#allocation34_spill]] %s3351_s9 }
   0x7   :  { %3386 = sst [smem:[#allocation35_spill]] %s3352_s10 }
   0x8   :  { %3387 = sst [smem:[#allocation36_spill]] %s3353_s11 }
   0x9   :  { %3388 = sst [smem:[#allocation37_spill]] %s3354_s12 }
   0xa   :  { %3389 = sst [smem:[#allocation38_spill]] %s3355_s13 }
   0xb   :  { %3390 = sst [smem:[#allocation39_spill]] %s3356_s14 }
   0xc   :  { %3391 = sst [smem:[#allocation40_spill]] %s3357_s15 }
   0xd   :  { %3392 = sst [smem:[#allocation41_spill]] %s3358_s16 }
   0xe   :  { %21 = vsyncpa [#allocation3], 0 }
   0xf   :  { %23 = vsyncpa [#allocation3 + $0x1], 0 }
  0x10   :  { %24 = vsyncpa [#allocation6], 0 }
  0x11   :  { %26 = vsyncpa [#allocation6 + $0x1], 0 }
  0x12   :  { %27 = vsyncpa [#allocation9], 0 }
  0x13   :  { %29 = vsyncpa [#allocation9 + $0x1], 0 }
  0x14   :  { %30 = vsyncpa [#allocation12], 0 }
  0x15   :  { %31 = vsyncpa [#allocation15], 0 }
  0x16   :  { %32 = vsyncpa [#allocation4], 0 }
  0x17   :  { %34 = vsyncpa [#allocation4 + $0x1], 0  ;;  %s2818_s21 = smov 0   ;;  %s2820_s22 = smov 0  }
  0x18   :  { %s2822_s23 = smov 0   ;;  %s2824_s24 = smov 0  }
  0x19 LB: > { %3393 = sst [smem:[#allocation24_spill]] %s2700_s21  ;;  %s2839_s25 = sadd.s32 4294967295, %s2712_s24   ;;  %s2712_s24 = sphi %s2824_s24, %s3447_s24   ;;  %s2708_s23 = sphi %s2822_s23, %s3451_s23   ;;  %s2704_s22 = sphi %s2820_s22, %s3450_s22   ;;  %s2700_s21 = sphi %s2818_s21, %s3449_s21  }
  0x1a   : > { %s2069_s26 = sadd.s32 4294967294, %s2712_s24   ;;  %p60_p0 = scmp.ne.s32.totalorder %s2704_s22, %s2700_s21 }
  0x1b   : > { %p3372_p1 = scmp.eq.s32.totalorder %s2839_s25, 0  ;;  %p414_p2 = scmp.eq.s32.totalorder %s2839_s25, 1 }
  0x1c   : > { %p420_p3 = scmp.eq.s32.totalorder %s2069_s26, 1  ;;  %p2070_p5 = scmp.ge.s32.totalorder %s2712_s24, 1 }
  0x1d   : > { %p2848_p4 = por %p3372_p1, %p60_p0  ;;  %p427_p7 = scmp.lt.s32.totalorder %s2712_s24, 3 }
  0x1e   : > { %p2853_p6 = por %p420_p3, %p60_p0  ;;  %s2714_s30 = smov [#allocation10]  }
  0x1f   : > { %s3394_s27 = scalar_select %p2848_p4, 1, 0 }
  0x20   : > { %s3395_s28 = scalar_select %p2853_p6, 1, 0 }
  0x21   : > { %p2858_p8 = pnand %p2070_p5, %p427_p7  ;;  %s439_s0 = sshll.u32 %s2714_s30, 4  ;;  %s440_s0 = int_to_ptr.vmem [resolvable:$true] %s439_s0 }
  0x22   : > { %3396 = sst [smem:[#allocation25_spill]] %s3395_s28  ;;  %s2715_s18 = smov [#allocation11]  }
  0x23   : > { %s3397_s29 = scalar_select %p2858_p8, 1, 0 }
  0x24   : > { %p2306_p9 = pneg %p2858_p8  ;;  %s455_s19 = sshll.u32 %s2715_s18, 4  ;;  %s456_s19 = int_to_ptr.vmem [resolvable:$true] %s455_s19 }
  0x25   : > { %s2423_s20 = scalar_lea.vmem %s440_s0, 512  ;;  %p2431_p5 = scmp.lt.s32.totalorder %s440_s0, %s440_s0 }
  0x26   : > { %p2867_p11 = pnand %p2306_p9, %p3372_p1  ;;  %p2424_p13 = scmp.ne.s32.totalorder %s440_s0, %s2423_s20 }
  0x27   : > { %p2432_p7 = scmp.lt.s32.totalorder %s2423_s20, %s2423_s20 }
  0x28   : > { %s3398_s17 = scalar_select %p2867_p11, 1, 0 }
  0x29   : > { %p3373_p12 = pneg %p2867_p11  ;;  %p2433_p10 = por %p2432_p7, %p2431_p5 }
  0x2b   : > { %p2426_p0 = pnand %p2424_p13, %p3373_p12 }
  0x2d   : > { %p2427_p3 = pneg %p2426_p0 }
  0x2f   : > { %p2434_p9 = pnand %p2433_p10, %p2427_p3 }
  0x31   : > { %2437 = shalt.err (!%p2434_p9)
}
  0x32   : > { %s3363_s26 = smov 128   ;;  %s3365_s30 = smov 8  }
  0x33   : > { %s3399_s4 = sld [smem:[#allocation31_spill]]  ;;  %s2449_s21 = scalar_lea.vmem %s456_s19, 256 }
  0x34   : > { %p2450_p13 = scmp.ne.s32.totalorder %s456_s19, %s2449_s21  ;;  %p2457_p10 = scmp.lt.s32.totalorder %s456_s19, %s456_s19 }
  0x35   : > { %p2458_p3 = scmp.lt.s32.totalorder %s2449_s21, %s2449_s21 }
  0x36   : > { %p2452_p0 = pnand %p2450_p13, %p3373_p12 }
  0x37   : > { %p2459_p7 = por %p2458_p3, %p2457_p10 }
  0x38   : > { %p2453_p5 = pneg %p2452_p0 }
  0x39   : > { %2309 = dma.hbm_to_vmem [thread:$0]  (!%p2867_p11), %s3399_s4, 512, %s440_s0, [#allocation9], %s3363_s26, %s3363_s26, %s3365_s30  }
  0x3a   : > { %p2460_p9 = pnand %p2459_p7, %p2453_p5 }
  0x3c   : > { %2463 = shalt.err (!%p2460_p9)
}
  0x3d   : > { %s3400_s6 = sld [smem:[#allocation32_spill]]  ;;  %s2896_s21 = sadd.s32 1, %s2712_s24  }
  0x3e   : > { %3401 = sst [smem:[#allocation26_spill]] %s2896_s21  ;;  %s47_s28 = sadd.s32 1, %s2708_s23 }
  0x3f   : > { %s44_s0 = ssub.s32 %s2712_s24, %s2896_s21  ;;  %p54_p13 = scmp.ne.s32.totalorder %s2708_s23, %s2704_s22 }
  0x40   : > { %p45_p0 = scmp.eq.s32.totalorder %s44_s0, 0  ;;  %p55_p5 = scmp.eq.s32.totalorder %s2712_s24, 0 }
  0x41   : > { %p2906_p10 = por %p414_p2, %p54_p13  ;;  %p2340_p3 = scmp.lt.s32.totalorder %s2712_s24, 2 }
  0x42   : > { %s2912_s18 = scalar_select %p45_p0, %s2708_s23, %s47_s28  }
  0x43   : > { %2312 = dma.hbm_to_vmem [thread:$0]  (!%p2867_p11), %s3400_s6, 256, %s456_s19, [#allocation12], %s3363_s26, %s3363_s26, %s3365_s30  }
  0x44   : > { %s3402_s16 = scalar_select %p2906_p10, 1, 0 }
  0x45   : > { %3404 = sst [smem:[#allocation28_spill]] %s2912_s18  ;;  %p56_p7 = por %p55_p5, %p54_p13 }
  0x46   : > { %3403 = sst [smem:[#allocation27_spill]] %s3402_s16  ;;  %s3367_s20 = sand.u32 1, %s2708_s23  }
  0x47   : > { %s2917_s19 = sshll.u32 %s3367_s20, 3  ;;  %s2920_s26 = sshll.u32 %s2712_s24, 7 }
  0x48   : > { %p2922_p9 = pnand %p2340_p3, %p56_p7  ;;  %s3374_s30 = sand.u32 1, %s2712_s24  }
  0x49   : > { %s3406_s1 = sld [smem:[#allocation30_spill]]  ;;  %s538_s20 = scalar_lea.vmem [#allocation5], %s2917_s19 }
  0x4a   : > { %s545_s18 = sshll.u32 %s538_s20, 4  ;;  %s2936_s21 = scalar_lea.sflag [#allocation6], %s3374_s30  ;;  %s546_s18 = int_to_ptr.vmem [resolvable:$true] %s545_s18 }
  0x4b   : > { %p2942_p13 = pneg %p2922_p9 }
  0x4f   : > { %s2931_s28 = scalar_lea.hbm %s3406_s1, %s2920_s26  ;;  %s2469_s9 = scalar_lea.hbm %s3406_s1, 256 }
  0x50   : > { %s2464_s11 = scalar_lea.hbm %s2931_s28, 128  ;;  %p2470_p3 = scmp.lt.s32.totalorder %s2931_s28, %s3406_s1 }
  0x51   : > { %p2465_p2 = scmp.ne.s32.totalorder %s2931_s28, %s2464_s11  ;;  %p2471_p7 = scmp.lt.s32.totalorder %s2469_s9, %s2464_s11 }
  0x53   : > { %p2467_p0 = pnand %p2942_p13, %p2465_p2  ;;  %p2472_p1 = por %p2471_p7, %p2470_p3 }
  0x55   : > { %p2468_p5 = pneg %p2467_p0 }
  0x57   : > { %p2473_p12 = pnand %p2472_p1, %p2468_p5 }
  0x59   : > { %2476 = shalt.err (!%p2473_p12)
}
  0x5a   : > { %s2477_s30 = scalar_lea.vmem %s546_s18, 128  ;;  %s2718_s14 = smov [#allocation5]  }
  0x5b   : > { %p2478_p6 = scmp.ne.s32.totalorder %s546_s18, %s2477_s30  ;;  %s2482_s13 = sshll.u32 %s2718_s14, 4  ;;  %s2483_s13 = int_to_ptr.vmem [resolvable:$false] %s2482_s13 }
  0x5c   : > { %s2484_s12 = scalar_lea.vmem %s2483_s13, 256  ;;  %p2485_p2 = scmp.lt.s32.totalorder %s546_s18, %s2483_s13 }
  0x5d   : > { %p2480_p10 = pnand %p2478_p6, %p2942_p13  ;;  %p2486_p0 = scmp.lt.s32.totalorder %s2484_s12, %s2477_s30 }
  0x5f   : > { %p2481_p4 = pneg %p2480_p10  ;;  %p2487_p8 = por %p2486_p0, %p2485_p2 }
  0x61   : > { %p2488_p11 = pnand %p2487_p8, %p2481_p4 }
  0x63   : > { %2491 = shalt.err (!%p2488_p11)
}
  0x64   : > { %2325 = dma.hbm_to_vmem [thread:$0]  (!%p2922_p9), %s2931_s28, 128, %s546_s18, %s2936_s21  }
  0x65   : > { %s2719_s9 = smov [#allocation13]   ;;  %s2720_s15 = smov [#allocation14]  }
  0x66   : > { %s471_s11 = sshll.u32 %s2719_s9, 4  ;;  %s487_s4 = sshll.u32 %s2720_s15, 4  ;;  %s472_s11 = int_to_ptr.vmem [resolvable:$true] %s471_s11  ;;  %s488_s4 = int_to_ptr.vmem [resolvable:$true] %s487_s4 }
  0x67   : > { %s2503_s6 = scalar_lea.vmem %s472_s11, 256  ;;  %p3408_p6 = scmp.ne.s32.totalorder %s3398_s17, 0 }
  0x68   : > { %p2504_p1 = scmp.ne.s32.totalorder %s472_s11, %s2503_s6  ;;  %p2511_p3 = scmp.lt.s32.totalorder %s472_s11, %s472_s11 }
  0x69   : > { %p3409_p12 = pneg %p3408_p6  ;;  %p2512_p4 = scmp.lt.s32.totalorder %s2503_s6, %s2503_s6 }
  0x6b   : > { %p2506_p10 = pnand %p2504_p1, %p3409_p12  ;;  %p2513_p8 = por %p2512_p4, %p2511_p3 }
  0x6d   : > { %p2507_p5 = pneg %p2506_p10 }
  0x6f   : > { %p2514_p11 = pnand %p2513_p8, %p2507_p5 }
  0x71   : > { %2517 = shalt.err (!%p2514_p11)
}
  0x72   : > { %s3410_s12 = smov 8   ;;  %s3411_s13 = smov 128  }
  0x73   : > { %s3412_s8 = sld [smem:[#allocation33_spill]]  ;;  %s2529_s18 = scalar_lea.vmem %s488_s4, 512 }
  0x74   : > { %p2530_p7 = scmp.ne.s32.totalorder %s488_s4, %s2529_s18  ;;  %p3413_p2 = pmov %p3409_p12 }
  0x75   : > { %p2537_p12 = scmp.lt.s32.totalorder %s488_s4, %s488_s4  ;;  %p2538_p10 = scmp.lt.s32.totalorder %s2529_s18, %s2529_s18 }
  0x76   : > { %p2532_p0 = pnand %p2530_p7, %p3413_p2 }
  0x77   : > { %p2539_p5 = por %p2538_p10, %p2537_p12 }
  0x78   : > { %p2533_p1 = pneg %p2532_p0 }
  0x79   : > { %2315 = dma.hbm_to_vmem [thread:$0]  (!%p3408_p6), %s3412_s8, 256, %s472_s11, [#allocation12], %s3411_s13, %s3411_s13, %s3410_s12  }
  0x7a   : > { %p2540_p3 = pnand %p2539_p5, %p2533_p1 }
  0x7c   : > { %2543 = shalt.err (!%p2540_p3)
}
  0x7d   : > { %s3414_s10 = sld [smem:[#allocation35_spill]]  ;;  %s520_s17 = scalar_lea.vmem [#allocation2], %s2917_s19 }
  0x7e   : > { %s3415_s15 = sld [smem:[#allocation29_spill]]  ;;  %s527_s14 = sshll.u32 %s520_s17, 4  ;;  %s528_s14 = int_to_ptr.vmem [resolvable:$true] %s527_s14 }
  0x7f   : > { %s2994_s28 = scalar_lea.hbm %s3344_s2, %s2920_s26  ;;  %s3416_s20 = sand.u32 1, %s2708_s23  }
  0x80   : > { %s517_s1 = scalar_lea.sflag [#allocation3], %s3416_s20 }
  0x83   : > { %2318 = dma.hbm_to_vmem [thread:$0]  (!%p3408_p6), %s3414_s10, 512, %s488_s4, [#allocation15], %s3411_s13, %s3411_s13, %s3410_s12  }
  0x84   : > { %s2987_s6 = scalar_lea.hbm %s3415_s15, %s2920_s26  ;;  %s2549_s13 = scalar_lea.hbm %s3415_s15, 256 }
  0x85   : > { %s2544_s8 = scalar_lea.hbm %s2987_s6, 128  ;;  %p2550_p11 = scmp.lt.s32.totalorder %s2987_s6, %s3415_s15 }
  0x86   : > { %p2545_p6 = scmp.ne.s32.totalorder %s2987_s6, %s2544_s8  ;;  %p2551_p7 = scmp.lt.s32.totalorder %s2549_s13, %s2544_s8 }
  0x88   : > { %p2547_p4 = pnand %p2545_p6, %p2942_p13  ;;  %p2552_p2 = por %p2551_p7, %p2550_p11 }
  0x8a   : > { %p2548_p8 = pneg %p2547_p4 }
  0x8c   : > { %p2553_p0 = pnand %p2552_p2, %p2548_p8 }
  0x8e   : > { %2556 = shalt.err (!%p2553_p0)
}
  0x8f   : > { %s2557_s17 = scalar_lea.vmem %s528_s14, 128  ;;  %s2721_s30 = smov [#allocation2]  }
  0x90   : > { %p2558_p1 = scmp.ne.s32.totalorder %s528_s14, %s2557_s17  ;;  %s2562_s18 = sshll.u32 %s2721_s30, 4  ;;  %s2563_s18 = int_to_ptr.vmem [resolvable:$false] %s2562_s18 }
  0x91   : > { %s2564_s20 = scalar_lea.vmem %s2563_s18, 256  ;;  %p2565_p5 = scmp.lt.s32.totalorder %s528_s14, %s2563_s18 }
  0x92   : > { %p2560_p12 = pnand %p2558_p1, %p2942_p13  ;;  %p2566_p3 = scmp.lt.s32.totalorder %s2564_s20, %s2557_s17 }
  0x94   : > { %p2561_p10 = pneg %p2560_p12  ;;  %p2567_p6 = por %p2566_p3, %p2565_p5 }
  0x96   : > { %p2568_p4 = pnand %p2567_p6, %p2561_p10 }
  0x98   : > { %2571 = shalt.err (!%p2568_p4)
}
  0x99   : > { %2322 = dma.hbm_to_vmem [thread:$0]  (!%p2922_p9), %s2987_s6, 128, %s528_s14, %s517_s1  }
  0x9a   : > { %s556_s8 = scalar_lea.vmem [#allocation7], %s2917_s19  ;;  %s3019_s9 = scalar_lea.hbm %s3345_s3, %s2920_s26 }
  0x9b   : > { %s563_s4 = sshll.u32 %s556_s8, 4  ;;  %s2572_s11 = scalar_lea.hbm %s2994_s28, 128  ;;  %s564_s4 = int_to_ptr.vmem [resolvable:$true] %s563_s4 }
  0x9c   : > { %p2573_p8 = scmp.ne.s32.totalorder %s2994_s28, %s2572_s11  ;;  %s2577_s18 = scalar_lea.hbm %s3344_s2, 256 }
  0x9d   : > { %p2578_p2 = scmp.lt.s32.totalorder %s2994_s28, %s3344_s2  ;;  %p2579_p0 = scmp.lt.s32.totalorder %s2577_s18, %s2572_s11 }
  0x9e   : > { %p2575_p11 = pnand %p2573_p8, %p2942_p13 }
  0x9f   : > { %p2580_p1 = por %p2579_p0, %p2578_p2 }
  0xa0   : > { %p2576_p7 = pneg %p2575_p11 }
  0xa2   : > { %p2581_p12 = pnand %p2580_p1, %p2576_p7 }
  0xa4   : > { %2584 = shalt.err (!%p2581_p12)
}
  0xa5   : > { %s2585_s1 = scalar_lea.vmem %s564_s4, 128  ;;  %s2722_s26 = smov [#allocation7]  }
  0xa6   : > { %p2586_p10 = scmp.ne.s32.totalorder %s564_s4, %s2585_s1  ;;  %s2590_s6 = sshll.u32 %s2722_s26, 4  ;;  %s2591_s6 = int_to_ptr.vmem [resolvable:$false] %s2590_s6 }
  0xa7   : > { %s2592_s14 = scalar_lea.vmem %s2591_s6, 256  ;;  %p2593_p6 = scmp.lt.s32.totalorder %s564_s4, %s2591_s6 }
  0xa8   : > { %p2588_p5 = pnand %p2586_p10, %p2942_p13  ;;  %p2594_p4 = scmp.lt.s32.totalorder %s2592_s14, %s2585_s1 }
  0xaa   : > { %p2589_p3 = pneg %p2588_p5  ;;  %p2595_p8 = por %p2594_p4, %p2593_p6 }
  0xac   : > { %p2596_p11 = pnand %p2595_p8, %p2589_p3 }
  0xae   : > { %2599 = shalt.err (!%p2596_p11)
}
  0xaf   : > { %2328 = dma.hbm_to_vmem [thread:$0]  (!%p2922_p9), %s2994_s28, 128, %s564_s4, %s2936_s21  }
  0xb0   : > { %s574_s10 = scalar_lea.vmem [#allocation8], %s2917_s19  ;;  %s3417_s12 = sand.u32 1, %s2712_s24  }
  0xb1   : > { %s581_s8 = sshll.u32 %s574_s10, 4  ;;  %s571_s13 = scalar_lea.sflag [#allocation9], %s3417_s12  ;;  %s582_s8 = int_to_ptr.vmem [resolvable:$true] %s581_s8 }
  0xb2   : > { %s2600_s11 = scalar_lea.hbm %s3019_s9, 128  ;;  %s2605_s18 = scalar_lea.hbm %s3345_s3, 256 }
  0xb3   : > { %p2601_p7 = scmp.ne.s32.totalorder %s3019_s9, %s2600_s11  ;;  %p2606_p1 = scmp.lt.s32.totalorder %s3019_s9, %s3345_s3 }
  0xb4   : > { %p2607_p12 = scmp.lt.s32.totalorder %s2605_s18, %s2600_s11 }
  0xb5   : > { %p2603_p2 = pnand %p2601_p7, %p2942_p13 }
  0xb6   : > { %p2608_p10 = por %p2607_p12, %p2606_p1 }
  0xb7   : > { %p2604_p0 = pneg %p2603_p2 }
  0xb9   : > { %p2609_p5 = pnand %p2608_p10, %p2604_p0 }
  0xbb   : > { %2612 = shalt.err (!%p2609_p5)
}
  0xbc   : > { %s2613_s21 = scalar_lea.vmem %s582_s8, 128  ;;  %s2723_s19 = smov [#allocation8]  }
  0xbd   : > { %p2614_p3 = scmp.ne.s32.totalorder %s582_s8, %s2613_s21  ;;  %s2618_s28 = sshll.u32 %s2723_s19, 4  ;;  %s2619_s28 = int_to_ptr.vmem [resolvable:$false] %s2618_s28 }
  0xbe   : > { %s2620_s4 = scalar_lea.vmem %s2619_s28, 256  ;;  %p2621_p8 = scmp.lt.s32.totalorder %s582_s8, %s2619_s28 }
  0xbf   : > { %p2616_p6 = pnand %p2614_p3, %p2942_p13  ;;  %p2622_p11 = scmp.lt.s32.totalorder %s2620_s4, %s2613_s21 }
  0xc1   : > { %p2617_p4 = pneg %p2616_p6  ;;  %p2623_p7 = por %p2622_p11, %p2621_p8 }
  0xc3   : > { %p2624_p2 = pnand %p2623_p7, %p2617_p4 }
  0xc5   : > { %2627 = shalt.err (!%p2624_p2)
}
  0xc6   : > { %2331 = dma.hbm_to_vmem [thread:$0]  (!%p2922_p9), %s3019_s9, 128, %s582_s8, %s571_s13  }
  0xc7   : > { %p3418_p0 = scmp.ne.s32.totalorder %s3397_s29, 0 }
  0xc8   : > { %s3060_s16 = sand.u32 (!%p3418_p0), 1, %s2704_s22   ;;  %p3419_p13 = scmp.ne.s32.totalorder (!%p3418_p0), %s3394_s27, 0 }
  0xc9   : > { %590 = sbr.rel (%p3418_p0) target bundleno = 2116 (0x844), region = 84  ;;  %s3063_s26 = sshll.u32 (!%p3418_p0), %s3060_s16, 3 }
  0xca   : > { %s593_s6 = scalar_lea.sflag (!%p3418_p0), [#allocation3], %s3060_s16  ;;  %s596_s14 = scalar_lea.vmem (!%p3418_p0), [#allocation2], %s3063_s26 }
  0xce   : > { %2671 = dma.done.wait (%p3419_p13), %s593_s6, 128  }
  0xcf   : > { %2673 = vsyncadd (%p3419_p13), %s593_s6, 4294967168  ;;  %s601_s29 = sand.u32 1, %s2839_s25   ;;  %s605_s9 = scalar_lea.vmem [#allocation5], %s3063_s26 }
  0xd0   : > { %s602_s0 = scalar_lea.sflag [#allocation6], %s601_s29 }
  0xd1   : > { %2675 = dma.done.wait (%p3419_p13), %s602_s0, 256  }
  0xd2   : > { %2677 = vsyncadd (%p3419_p13), %s602_s0, 4294967040  ;;  %s614_s10 = scalar_lea.vmem [#allocation7], %s3063_s26  ;;  %s620_s8 = scalar_lea.sflag [#allocation9], %s601_s29 }
  0xd3   : > { %s623_s12 = scalar_lea.vmem [#allocation8], %s3063_s26 }
  0xd4   : > { %2679 = dma.done.wait (%p3419_p13), %s620_s8, 128  }
  0xd5   : > { %2681 = vsyncadd (%p3419_p13), %s620_s8, 4294967168  ;;  %p3420_p9 = scmp.eq.s32.totalorder %s2839_s25, 0 }
  0xd7   : > { %2683 = dma.done.wait (%p3420_p9), [#allocation9], 512   ;;  %p3421_p1 = pmov %p3420_p9 }
  0xd9   : > { %2685 = vsyncadd (%p3421_p1), [#allocation9], 4294966784  ;;  %p3422_p12 = pmov %p3421_p1 }
  0xda   : > { %p3423_p10 = pmov %p3421_p1 }
  0xdb   : > { %2687 = dma.done.wait (%p3422_p12), [#allocation12], 512  }
  0xdc   : > { %2689 = vsyncadd (%p3423_p10), [#allocation12], 4294966784  ;;  %p3424_p5 = pmov %p3421_p1 }
  0xdd   : > { %p3425_p3 = pmov %p3421_p1 }
  0xde   : > { %2691 = dma.done.wait (%p3424_p5), [#allocation15], 512  }
  0xdf   : > { %2693 = vsyncadd (%p3425_p3), [#allocation15], 4294966784  ;;  %v2724_v0 = vmov 0.0   ;;  %vm2725_vm0 = vmmov 0   ;;  %vm717_vm1 = vcmask 261120   ;;  %v709_v1 = vld [vmem:[#allocation10 + $0x18] sm:$0xff]  ;;  %v981_v11 = vlaneseq }
  0xe0   : > { %2188 = vmatprep.subr.mxu0 %v2724_v0  ;;  %2199 = vmatprep.subr.mxu1 %v2724_v0  ;;  %v804_v2 = vld [vmem:[#allocation11 + $0x8] sm:$0xff]  ;;  %v708_v3 = vld [vmem:[#allocation10 + $0x10] sm:$0xff]  ;;  %v803_v4 = vld [vmem:[#allocation11] sm:$0xff]  ;;  %v2726_v20 = vmov 0.125   ;;  %vm996_vm6 = vcmask 130048   ;;  %s3434_s20 = sld [smem:[#allocation37_spill]] }
  0xe1   : > { %2203 = vmatprep.mubr.msk.f32.mxu1 %vm2725_vm0, %v2724_v0  ;;  %2196 = vmatprep.mubr.msk.f32.mxu0 %vm2725_vm0, %v2724_v0  ;;  %v704_v5 = vld [vmem:[%s605_s9] sm:$0xff]  ;;  %v707_v6 = vld [vmem:[#allocation10 + $0x8] sm:$0xff]  ;;  %v706_v8 = vld [vmem:[#allocation10] sm:$0xff]  ;;  %v982_v12 = vshrl.u32 %v981_v11, 7  ;;  %v1044_v14 = vand.u32 127, %v981_v11  ;;  %s3435_s19 = sld [smem:[#allocation38_spill]] }
  0xe2   : > { %2189 = vmatpush3.xpose.msk.msra.mxu0 %vm717_vm1, %v709_v1  ;;  %2200 = vmatpush3.xpose.msk.msra.mxu1 %vm717_vm1, %v804_v2  ;;  %v892_v7 = vld [vmem:[#allocation13 + $0x8] sm:$0xff]  ;;  %v891_v9 = vld [vmem:[#allocation13] sm:$0xff]  ;;  %v703_v10 = vld [vmem:[%s596_s14] sm:$0xff]  ;;  %s2727_s28 = smov 8   ;;  %s2728_s4 = smov 24   ;;  %vm994_vm7 = vcmask 64512  }
  0xe3   : > { %2190 = vmatprep.subr.mxu0 %v2724_v0  ;;  %2201 = vmatprep.subr.mxu1 %v2724_v0  ;;  %v1040_v13 = vadd.s32 8, %v982_v12  ;;  %v1049_v16 = vshra.s32 %v1044_v14, 3  ;;  %v1045_v18 = vshra.s32 %v982_v12, 3  ;;  %v1042_v19 = vadd.s32 24, %v982_v12  ;;  %v705_v21 = vld [vmem:[%s614_s10] sm:$0xff]  ;;  %s2729_s6 = smov 16  }
  0xe4   : > { %v1041_v24 = vadd.s32 16, %v982_v12  ;;  %v2100_v28 = vld [vmem:[%s3349_s7] ss:$0 sm:$0xff]  ;;  %v3197_v38 = vsub.s32 0, %v982_v12  ;;  %s3436_s0 = sld [smem:[#allocation39_spill]]  ;;  %vm998_vm8 = vcmask 195584  }
  0xe5   : > { %v1046_v15 = vshra.s32 %v1040_v13, 3  ;;  %vm3137_vm3 = vcmp.eq.s32.totalorder %v1045_v18, %v1049_v16  ;;  %v1048_v23 = vshra.s32 %v1042_v19, 3  ;;  %v2094_v32 = vld [vmem:[%s3347_s5] ss:$0 sm:$0xff]  ;;  %s3437_s8 = sld [smem:[#allocation40_spill]]  ;;  %s2730_s17 = smov 120  }
  0xe6   : > { %2191 = vmatpush3.xpose.msk.msra.mxu0 %vm717_vm1, %v708_v3  ;;  %2202 = vmatpush3.xpose.msk.msra.mxu1 %vm717_vm1, %v803_v4  ;;  %v1047_v26 = vshra.s32 %v1041_v24, 3  ;;  %v979_v39 = vld [vmem:[%s3434_s20] sm:$0x1]  ;;  %s3438_s11 = sld [smem:[#allocation34_spill]]  ;;  %s2731_s30 = smov 112  }
  0xe7   : > { %2192 = vmatprep.subr.mxu0 %v2724_v0  ;;  %2206 = vmatprep.subr.mxu1 %v2724_v0  ;;  %vm3127_vm2 = vcmp.eq.s32.totalorder %v1046_v15, %v1049_v16  ;;  %vm3145_vm4 = vcmp.eq.s32.totalorder %v1048_v23, %v1049_v16  ;;  %v1000_v40 = vld [vmem:[%s3435_s19] sm:$0x1]  ;;  %v984_v41 = vrot.slane %v979_v39, %v3197_v38  ;;  %s3440_s1 = sld [smem:[#allocation36_spill]]  ;;  %s2141_s21 = sshll.u32 %s2839_s25, 7 }
  0xe8   : > { %vm3155_vm5 = vcmp.eq.s32.totalorder %v1047_v26, %v1049_v16  ;;  %v1005_v42 = vrot.slane %v1000_v40, %v3197_v38  ;;  %s702_s19 = scalar_lea.vmem [#allocation16], %s3063_s26  ;;  %s3441_s14 = sld [smem:[#allocation41_spill]] }
  0xe9   : > { %2204 = vmatmul.mubr.msk.f32.vlgmr.msra.gmra.mxu1 %vm717_vm1, %v704_v5  ;;  %985 = vrot.lane.b32.xlu0 %v984_v41, %s2727_s28  ;;  %s2732_s25 = smov [#allocation16]  }
  0xea   : > { %2193 = vmatpush3.xpose.msk.msra.mxu0 %vm717_vm1, %v707_v6  ;;  %2207 = vmatpush3.xpose.msk.msra.mxu1 %vm717_vm1, %v892_v7  ;;  %v1018_v43 = vld [vmem:[%s3436_s0] sm:$0x1]  ;;  %s1882_s0 = scalar_lea.sflag [#allocation4], %s3060_s16  ;;  %s2632_s26 = sshll.u32 %s2732_s25, 4  ;;  %s2633_s26 = int_to_ptr.vmem [resolvable:$false] %s2632_s26 }
  0xeb   : > { %2194 = vmatprep.subr.mxu0 %v2724_v0  ;;  %2208 = vmatprep.subr.mxu1 %v2724_v0  ;;  %v1028_v44 = vld [vmem:[%s3437_s8] sm:$0x1]  ;;  %v1023_v45 = vrot.slane %v1018_v43, %v3197_v38  ;;  %s2634_s10 = scalar_lea.vmem %s2633_s26, 256 }
  0xec   : > { %2210 = vmatprep.mubr.msk.f32.mxu1 %vm2725_vm0, %v2724_v0  ;;  %991 = vrot.lane.b32.xlu1 %v984_v41, %s2728_s4  ;;  %v1033_v46 = vrot.slane %v1028_v44, %v3197_v38  ;;  %v2104_v54 = vld [vmem:[%s3438_s11] ss:$0 sm:$0xff] }
  0xed   : > { %988 = vrot.lane.b32.xlu0 %v984_v41, %s2729_s6 }
  0xee   : > { %2195 = vmatpush3.xpose.msk.msra.mxu0 %vm717_vm1, %v706_v8  ;;  %2209 = vmatpush3.xpose.msk.msra.mxu1 %vm717_vm1, %v891_v9  ;;  %s3304_s29 = scalar_lea.hbm %s3441_s14, %s2141_s21 }
  0xef   : > { %2235 = vmatprep.subr.mxu0 %v2724_v0  ;;  %2213 = vmatprep.subr.mxu1 %v2724_v0 }
  0xf0   : > { %1006 = vrot.lane.b32.xlu1 %v1005_v42, %s2727_s28 }
  0xf1   : > { %2197 = vmatmul.mubr.msk.f32.vlgmr.msra.gmra.mxu0 %vm717_vm1, %v703_v10  ;;  %2211 = vmatmul.mubr.msk.f32.vlgmr.msra.gmra.mxu1 %vm717_vm1, %v705_v21 }
  0xf2   : > { %2239 = vmatprep.mubr.msk.f32.mxu0 %vm2725_vm0, %v2724_v0  ;;  %2236 = vmatpush3.msk.msra.mxu0 %vm3127_vm2, %v2726_v20 }
  0xf3   : > { %2237 = vmatprep.subr.mxu0 %v2724_v0  ;;  %2221 = vmatprep.mubr.msk.f32.mxu1 %vm2725_vm0, %v2724_v0 }
  0xf4   : > { %2238 = vmatpush3.msk.msra.mxu0 %vm3137_vm3, %v2726_v20  ;;  %2214 = vmatpush3.msk.msra.mxu1 %vm3145_vm4, %v2726_v20 }
  0xf5   : > { %2215 = vmatprep.subr.mxu1 %v2724_v0  ;;  %1009 = vrot.lane.b32.xlu0 %v1005_v42, %s2729_s6 }
  0xf6   : > { %2216 = vmatpush3.msk.msra.mxu1 %vm3155_vm5, %v2726_v20  ;;  %1012 = vrot.lane.b32.xlu1 %v1005_v42, %s2728_s4 }
  0xf7   : > { %2217 = vmatprep.subr.mxu1 %v2724_v0 }
  0xf8   : > { %2218 = vmatpush3.msk.msra.mxu1 %vm3127_vm2, %v2726_v20 }
  0xf9   : > { %2219 = vmatprep.subr.mxu1 %v2724_v0  ;;  %1024 = vrot.lane.b32.xlu0 %v1023_v45, %s2727_s28 }
  0xfa   : > { %2220 = vmatpush3.msk.msra.mxu1 %vm3137_vm3, %v2726_v20  ;;  %1034 = vrot.lane.b32.xlu1 %v1033_v46, %s2727_s28 }
  0xfb   : > { %2224 = vmatprep.subr.mxu1 %v2724_v0 }
 0x15b   : > { %v986_v57 = vpop.permute.xlu0 %985 }
 0x15c   : > { %v995_v5 = vsel %vm994_vm7, %v979_v39, %v986_v57 }
 0x15e   : > { %v992_v58 = vpop.permute.xlu1 %991 }
 0x15f   : > { %v989_v62 = vpop.permute.xlu0 %988 }
 0x160   : > { %v997_v7 = vsel %vm996_vm6, %v995_v5, %v989_v62 }
 0x161   : > { %v999_v11 = vsel %vm998_vm8, %v997_v7, %v992_v58 }
 0x162   : > { %v1007_v2 = vpop.permute.xlu1 %1006  ;;  %v1211_v16 = vrot.slane %v999_v11, %v3197_v38 }
 0x163   : > { %v1015_v6 = vsel %vm994_vm7, %v1000_v40, %v1007_v2 }
 0x167   : > { %v1010_v4 = vpop.permute.xlu0 %1009 }
 0x168   : > { %v1013_v8 = vpop.permute.xlu1 %1012  ;;  %v1016_v9 = vsel %vm996_vm6, %v1015_v6, %v1010_v4 }
 0x169   : > { %v1017_v14 = vsel %vm998_vm8, %v1016_v9, %v1013_v8 }
 0x16a   : > { %v1216_v19 = vrot.slane %v1017_v14, %v3197_v38 }
 0x16b   : > { %v1025_v10 = vpop.permute.xlu0 %1024 }
 0x16c   : > { %v1035_v12 = vpop.permute.xlu1 %1034  ;;  %v1027_v15 = vsel %vm994_vm7, %v1018_v43, %v1025_v10 }
 0x16d   : > { %v1037_v18 = vsel %vm994_vm7, %v1028_v44, %v1035_v12 }
 0x16e   : > { %v1376_v24 = vrot.slane %v1037_v18, %v3197_v38 }
 0x1a9   : > { %v887_v29 = vpop.f32.mrf.mxu1 }
 0x1aa   : > { %v888_v30 = vadd.f32 %v2100_v28, %v887_v29 }
 0x1ab   : > { %v2205_v31 = vpop.f32.mrf.mxu1 }
 0x1ac   : > { %2240 = vmatmul.mubr.msk.f32.vlgmr.msra.gmra.mxu0 %vm996_vm6, %v888_v30 }
 0x1b1   : > { %v799_v33 = vpop.f32.mrf.mxu0  ;;  %v975_v36 = vpop.f32.mrf.mxu1 }
 0x1b2   : > { %v800_v34 = vadd.f32 %v2094_v32, %v799_v33  ;;  %v3232_v55 = vadd.f32 %v2104_v54, %v975_v36  ;;  %v1378_v33 = vld [vmem:[%s623_s12] sm:$0xff]  ;;  %s3439_s12 = sld [smem:[#allocation27_spill]] }
 0x1b3   : > { %v2198_v35 = vpop.f32.mrf.mxu0  ;;  %v2212_v37 = vpop.f32.mrf.mxu1 }
 0x1b4   : > { %2222 = vmatmul.mubr.msk.f32.vlgmr.msra.gmra.mxu1 %vm717_vm1, %v800_v34 }
 0x1b5   : > { %2225 = vmatpush3.msk.msra.mxu1 %vm3145_vm4, %v2726_v20  ;;  %2232 = vmatprep.mubr.msk.f32.mxu1 %vm2725_vm0, %v2724_v0 }
 0x1b6   : > { %2226 = vmatprep.subr.mxu1 %v2724_v0 }
 0x1b7   : > { %2227 = vmatpush3.msk.msra.mxu1 %vm3155_vm5, %v2726_v20 }
 0x1b8   : > { %2228 = vmatprep.subr.mxu1 %v2724_v0  ;;  %p3442_p4 = scmp.ne.s32.totalorder %s3439_s12, 0 }
 0x1b9   : > { %2229 = vmatpush3.msk.msra.mxu1 %vm3127_vm2, %v2726_v20 }
 0x1ba   : > { %2230 = vmatprep.subr.mxu1 %v2724_v0 }
 0x1bb   : > { %2231 = vmatpush3.msk.msra.mxu1 %vm3137_vm3, %v2726_v20 }
 0x1bc   : > { %2242 = vmatprep.subr.mxu1 %v2724_v0 }
 0x26c   : > { %v1287_v47 = vpop.f32.mrf.mxu0 }
 0x26d   : > { %v1291_v52 = vsub.f32 %v888_v30, %v1287_v47 }
 0x26e   : > { %v2241_v48 = vpop.f32.mrf.mxu0 }
 0x26f   : > { %v1292_v56 = vmul.f32 %v1291_v52, %v1291_v52 }
 0x274   : > { %v1127_v49 = vpop.f32.mrf.mxu1 }
 0x275   : > { %v1131_v50 = vsub.f32 %v800_v34, %v1127_v49 }
 0x276   : > { %v2223_v51 = vpop.f32.mrf.mxu1 }
 0x277   : > { %v1132_v53 = vmul.f32 %v1131_v50, %v1131_v50 }
 0x279   : > { %2233 = vmatmul.mubr.msk.f32.vlgmr.msra.gmra.mxu1 %vm717_vm1, %v1132_v53 }
 0x27a   : > { %2243 = vmatpush3.msk.msra.mxu1 %vm3127_vm2, %v2726_v20  ;;  %2246 = vmatprep.mubr.msk.f32.mxu1 %vm2725_vm0, %v2724_v0 }
 0x27b   : > { %2244 = vmatprep.subr.mxu1 %v2724_v0 }
 0x27c   : > { %2245 = vmatpush3.msk.msra.mxu1 %vm3137_vm3, %v2726_v20  ;;  %v1371_v20 = vrot.slane %v1027_v15, %v3197_v38 }
 0x27d   : > { %2254 = vmatprep.subr.mxu1 %v3232_v55  ;;  %2247 = vmatmul.mubr.msk.f32.vlgmr.msra.gmra.mxu1 %vm996_vm6, %v1292_v56 }
 0x27e   : > { %2255 = vmatpush3.msra.mxu1 %v3232_v55 }
 0x339   : > { %v1202_v59 = vpop.f32.mrf.mxu1 }
 0x33a   : > { %v1203_v60 = vadd.f32 1e-05, %v1202_v59 }
 0x33b   : > { %v2234_v61 = vpop.f32.mrf.mxu1 }
 0x33c   : > { %2392 = vrsqrt.f32 %v1203_v60 }
 0x33d   : > { %v1362_v63 = vpop.f32.mrf.mxu1 }
 0x33e   : > { %v1363_v1 = vadd.f32 1e-05, %v1362_v63 }
 0x33f   : > { %v2248_v3 = vpop.f32.mrf.mxu1 }
 0x340   : > { %2394 = vrsqrt.f32 %v1363_v1 }
 0x349   : > { %v2393_v13 = vpop.eup %2392 }
 0x34a   : > { %v1207_v17 = vmul.f32 %v2393_v13, %v1131_v50 }
 0x34c   : > { %v1212_v21 = vmul.f32 %v1211_v16, %v1207_v17 }
 0x34d   : > { %v2395_v22 = vpop.eup %2394 }
 0x34e   : > { %v1367_v23 = vmul.f32 %v2395_v22, %v1291_v52  ;;  %v1217_v25 = vadd.f32 %v1216_v19, %v1212_v21  ;;  %v1787_v19 = vld [vmem:[#allocation14 + $0x18] sm:$0xff]  ;;  %v1785_v22 = vld [vmem:[#allocation14 + $0x8] sm:$0xff] }
 0x350   : > { %v1372_v26 = vmul.f32 %v1371_v20, %v1367_v23  ;;  %1380 = vrot.lane.b32.xlu0 %v1217_v25, %s2730_s17  ;;  %2251 = vmatprep.mubr.msk.f32.mxu0 %vm994_vm7, %v1217_v25  ;;  %v1786_v20 = vld [vmem:[#allocation14 + $0x10] sm:$0xff]  ;;  %v1784_v23 = vld [vmem:[#allocation14] sm:$0xff] }
 0x352   : > { %v1377_v27 = vadd.f32 %v1376_v24, %v1372_v26 }
 0x354   : > { %1571 = vrot.lane.b32.xlu0 %v1217_v25, %s2731_s30  ;;  %1575 = vrot.lane.b32.xlu1 %v1377_v27, %s2730_s17 }
 0x355   : > { %2249 = vmatprep.subr.msk.mxu0 %vm994_vm7, %v1377_v27 }
 0x356   : > { %2250 = vmatpush3.xpose.msk.msra.mxu0 %vm994_vm7, %v1377_v27 }
 0x3c2   : > { %v1381_v28 = vpop.permute.xlu0 %1380 }
 0x3c3   : > { %1573 = vrot.lane.b32.xlu1 %v1381_v28, %s2731_s30  ;;  %2252 = vmatmul.mubr.msk.f32.vlgmr.msra.gmra.mxu0 %vm994_vm7, %v1381_v28 }
 0x3c6   : > { %v1572_v29 = vpop.permute.xlu0 %1571  ;;  %v1576_v30 = vpop.permute.xlu1 %1575 }
 0x3c7   : > { %2259 = vmatprep.subr.msk.mxu0 %vm994_vm7, %v1576_v30  ;;  %2261 = vmatprep.mubr.msk.f32.mxu0 %vm994_vm7, %v1572_v29 }
 0x3c8   : > { %2260 = vmatpush3.xpose.msk.msra.mxu0 %vm994_vm7, %v1576_v30 }
 0x3c9   : > { %2269 = vmatprep.subr.mxu0 %v2724_v0 }
 0x435   : > { %v1574_v31 = vpop.permute.xlu1 %1573 }
 0x436   : > { %2262 = vmatmul.mubr.msk.f32.vlgmr.msra.gmra.mxu0 %vm994_vm7, %v1574_v31 }
 0x437   : > { %2277 = vmatprep.mubr.msk.f32.mxu0 %vm2725_vm0, %v2724_v0  ;;  %2270 = vmatpush3.xpose.msk.msra.mxu0 %vm717_vm1, %v1787_v19 }
 0x438   : > { %2271 = vmatprep.subr.mxu0 %v2724_v0 }
 0x43b   : > { %2272 = vmatpush3.xpose.msk.msra.mxu0 %vm717_vm1, %v1786_v20 }
 0x43c   : > { %2273 = vmatprep.subr.mxu0 %v2724_v0 }
 0x43f   : > { %2274 = vmatpush3.xpose.msk.msra.mxu0 %vm717_vm1, %v1785_v22 }
 0x440   : > { %2275 = vmatprep.subr.mxu0 %v2724_v0 }
 0x443   : > { %2276 = vmatpush3.xpose.msk.msra.mxu0 %vm717_vm1, %v1784_v23 }
 0x483   : > { %v2253_v32 = vpop.f32.mrf.mxu0 }
 0x484   : > { %v1465_v34 = vmul.f32 0.35355338, %v2253_v32  ;;  %v2134_v32 = vld [vmem:[%s3440_s1] ss:$0 sm:$0xff] }
 0x485   : > { %v1455_v35 = vpop.f32.mrf.mxu0 }
 0x486   : > { %v1464_v36 = vmul.f32 0.35355338, %v1455_v35  ;;  %v1467_v37 = vadd.f32 %v1465_v34, %v1378_v33 }
 0x488   : > { %v1471_v38 = vsel %vm994_vm7, %v1467_v37, -inf  ;;  %v1466_v39 = vadd.f32 %v1464_v36, %v1378_v33 }
 0x489   : > { %1472 = vmax.xlane.f32.xlu1 %v1471_v38 }
 0x48a   : > { %v1468_v40 = vsel %vm994_vm7, %v1466_v39, -inf }
 0x48b   : > { %1469 = vmax.xlane.f32.xlu0 %v1468_v40 }
 0x4f6   : > { %v2263_v41 = vpop.f32.mrf.mxu0 }
 0x4f7   : > { %v1659_v43 = vmul.f32 0.35355338, %v2263_v41 }
 0x4f8   : > { %v1649_v42 = vpop.f32.mrf.mxu0 }
 0x4f9   : > { %v1658_v44 = vmul.f32 0.35355338, %v1649_v42  ;;  %v1661_v47 = vadd.f32 %v1659_v43, %v1378_v33 }
 0x4fb   : > { %v1660_v45 = vadd.f32 %v1658_v44, %v1378_v33  ;;  %v1665_v48 = vsel %vm994_vm7, %v1661_v47, -inf }
 0x4fd   : > { %v1662_v46 = vsel %vm994_vm7, %v1660_v45, -inf }
 0x4fe   : > { %1663 = vmax.xlane.f32.xlu0 %v1662_v46 }
 0x502   : > { %1666 = vmax.xlane.f32.xlu0 %v1665_v48 }
 0x512   : > { %v1473_v49 = vpop.xlane.xlu1 %1472 }
 0x513   : > { %v1475_v50 = vsub.f32 %v1467_v37, %v1473_v49 }
 0x514   : > { %v1470_v51 = vpop.xlane.xlu0 %1469 }
 0x515   : > { %v1478_v52 = vmul.f32 1.442695, %v1475_v50  ;;  %v1474_v53 = vsub.f32 %v1466_v39, %v1470_v51 }
 0x517   : > { %2396 = vpow2.f32 %v1478_v52  ;;  %v1476_v54 = vmul.f32 1.442695, %v1474_v53 }
 0x519   : > { %2398 = vpow2.f32 %v1476_v54 }
 0x524   : > { %v2397_v56 = vpop.eup %2396 }
 0x525   : > { %v1483_v57 = vsel %vm994_vm7, %v2397_v56, 0.0 }
 0x526   : > { %v2399_v58 = vpop.eup %2398  ;;  %1484 = vadd.xlane.f32.xlu0 %v1483_v57 }
 0x527   : > { %v1480_v59 = vsel %vm994_vm7, %v2399_v58, 0.0 }
 0x528   : > { %1481 = vadd.xlane.f32.xlu1 %v1480_v59 }
 0x587   : > { %v1664_v60 = vpop.xlane.xlu0 %1663 }
 0x588   : > { %v1668_v61 = vsub.f32 %v1660_v45, %v1664_v60 }
 0x58a   : > { %v1670_v62 = vmul.f32 1.442695, %v1668_v61 }
 0x58b   : > { %v1667_v63 = vpop.xlane.xlu0 %1666 }
 0x58c   : > { %2400 = vpow2.f32 %v1670_v62  ;;  %v1669_v1 = vsub.f32 %v1661_v47, %v1667_v63 }
 0x58e   : > { %v1672_v2 = vmul.f32 1.442695, %v1669_v1 }
 0x590   : > { %2402 = vpow2.f32 %v1672_v2 }
 0x599   : > { %v2401_v3 = vpop.eup %2400 }
 0x59a   : > { %v1674_v4 = vsel %vm994_vm7, %v2401_v3, 0.0 }
 0x59b   : > { %1675 = vadd.xlane.f32.xlu1 %v1674_v4 }
 0x59d   : > { %v2403_v5 = vpop.eup %2402 }
 0x59e   : > { %v1677_v6 = vsel %vm994_vm7, %v2403_v5, 0.0 }
 0x59f   : > { %1678 = vadd.xlane.f32.xlu0 %v1677_v6 }
 0x5ac   : > { %1685 = vrot.lane.b32.xlu1 %v3232_v55, %s2730_s17 }
 0x5af   : > { %v1485_v7 = vpop.xlane.xlu0 %1484 }
 0x5b0   : > { %2404 = vrcp.f32 %v1485_v7 }
 0x5b1   : > { %v1482_v8 = vpop.xlane.xlu1 %1481 }
 0x5b2   : > { %2406 = vrcp.f32 %v1482_v8 }
 0x5bd   : > { %v2405_v9 = vpop.eup %2404 }
 0x5be   : > { %v1489_v12 = vmul.f32 %v2405_v9, %v2397_v56 }
 0x5bf   : > { %v2407_v10 = vpop.eup %2406 }
 0x5c0   : > { %v1488_v11 = vmul.f32 %v2407_v10, %v2399_v58 }
 0x5c2   : > { %2256 = vmatprep.mubr.msk.f32.mxu1 %vm994_vm7, %v1488_v11 }
 0x5c3   : > { %2257 = vmatmul.mubr.msk.f32.vlgmr.msra.gmra.mxu1 %vm994_vm7, %v1489_v12 }
 0x624   : > { %v1676_v13 = vpop.xlane.xlu1 %1675 }
 0x625   : > { %2408 = vrcp.f32 %v1676_v13 }
 0x628   : > { %v1686_v14 = vpop.permute.xlu1 %1685  ;;  %v1679_v15 = vpop.xlane.xlu0 %1678 }
 0x629   : > { %2410 = vrcp.f32 %v1679_v15  ;;  %2264 = vmatprep.subr.mxu1 %v1686_v14 }
 0x62a   : > { %2265 = vmatpush3.msra.mxu1 %v1686_v14 }
 0x632   : > { %v2409_v55 = vpop.eup %2408 }
 0x633   : > { %v1682_v16 = vmul.f32 %v2409_v55, %v2401_v3 }
 0x635   : > { %2266 = vmatprep.mubr.msk.f32.mxu1 %vm994_vm7, %v1682_v16 }
 0x636   : > { %v2411_v17 = vpop.eup %2410 }
 0x637   : > { %v1683_v18 = vmul.f32 %v2411_v17, %v2403_v5 }
 0x639   : > { %2267 = vmatmul.mubr.msk.f32.vlgmr.msra.gmra.mxu1 %vm994_vm7, %v1683_v18 }
 0x683   : > { %v2258_v21 = vpop.f32.mrf.mxu1 }
 0x684   : > { %1770 = vrot.lane.b32.xlu0 %v2258_v21, %s2727_s28  ;;  %s1895_s28 = sshll.u32 %s702_s19, 4  ;;  %s1896_s28 = int_to_ptr.vmem [resolvable:$true] %s1895_s28 }
 0x685   : > { %v1562_v24 = vpop.f32.mrf.mxu1  ;;  %s2628_s9 = scalar_lea.vmem %s1896_s28, 128  ;;  %p2635_p7 = scmp.lt.s32.totalorder %s1896_s28, %s2633_s26 }
 0x686   : > { %p2629_p6 = scmp.ne.s32.totalorder %s1896_s28, %s2628_s9  ;;  %p2636_p2 = scmp.lt.s32.totalorder %s2634_s10, %s2628_s9 }
 0x688   : > { %p2630_p8 = pnand %p2629_p6, %p3442_p4  ;;  %p2637_p0 = por %p2636_p2, %p2635_p7 }
 0x68a   : > { %p2631_p11 = pneg %p2630_p8 }
 0x68c   : > { %p2638_p13 = pnand %p2637_p0, %p2631_p11 }
 0x6f6   : > { %v1771_v27 = vpop.permute.xlu0 %1770 }
 0x6f7   : > { %v1781_v29 = vsel %vm994_vm7, %v1562_v24, %v1771_v27 }
 0x6f9   : > { %v2268_v25 = vpop.f32.mrf.mxu1 }
 0x6fb   : > { %v1760_v26 = vpop.f32.mrf.mxu1 }
 0x6fc   : > { %1774 = vrot.lane.b32.xlu1 %v1760_v26, %s2729_s6 }
 0x700   : > { %1778 = vrot.lane.b32.xlu1 %v2268_v25, %s2728_s4 }
 0x76e   : > { %v1775_v28 = vpop.permute.xlu1 %1774 }
 0x76f   : > { %v1782_v30 = vsel %vm996_vm6, %v1781_v29, %v1775_v28 }
 0x772   : > { %v1779_v0 = vpop.permute.xlu1 %1778 }
 0x773   : > { %v1783_v31 = vsel %vm998_vm8, %v1782_v30, %v1779_v0 }
 0x774   : > { %2278 = vmatmul.mubr.msk.f32.vlgmr.msra.gmra.mxu0 %vm717_vm1, %v1783_v31 }
 0x834   : > { %v1876_v33 = vpop.f32.mrf.mxu0 }
 0x835   : > { %v1877_v34 = vadd.f32 %v2134_v32, %v1876_v33 }
 0x836   : > { %v2279_v35 = vpop.f32.mrf.mxu0 }
 0x837   : > { %1880 = vst.msk [vmem:[%s702_s19] sm:$0xff] %vm717_vm1, %v1877_v34 }
 0x838   : > { %2641 = shalt.err (!%p2638_p13)
}
 0x839   : > { %s2642_s8 = scalar_lea.hbm %s3304_s29, 128  ;;  %s2646_s13 = scalar_lea.hbm %s3441_s14, 256 }
 0x83a   : > { %p2643_p9 = scmp.ne.s32.totalorder %s3304_s29, %s2642_s8  ;;  %p2647_p10 = scmp.lt.s32.totalorder %s3304_s29, %s3441_s14 }
 0x83b   : > { %p2648_p5 = scmp.lt.s32.totalorder %s2646_s13, %s2642_s8 }
 0x83c   : > { %p2644_p1 = pnand %p2643_p9, %p3442_p4 }
 0x83d   : > { %p2649_p3 = por %p2648_p5, %p2647_p10 }
 0x83e   : > { %p2645_p12 = pneg %p2644_p1 }
 0x840   : > { %p2650_p6 = pnand %p2649_p3, %p2645_p12 }
 0x842   : > { %2653 = shalt.err (!%p2650_p6)
}
 0x843   : > { %2304 = dma.vmem_to_hbm [thread:$0]  (%p3442_p4), %s1896_s28, 128, %s3304_s29, %s1882_s0  }
 0x844 PF: > { %s3443_s30 = sld [smem:[#allocation24_spill]]  ;;  %p3446_p11 = scmp.ge.s32.totalorder %s2712_s24, 2 }
 0x845   : > { %s3444_s18 = sld [smem:[#allocation25_spill]] }
 0x84a   : > { %s1907_s20 = sand.u32 1, %s3443_s30  }
 0x84b   : > { %p3445_p8 = scmp.ne.s32.totalorder %s3444_s18, 0  ;;  %s1908_s1 = scalar_lea.sflag [#allocation4], %s1907_s20 }
 0x84d   : > { %p2333_p7 = pnand %p3446_p11, %p3445_p8 }
 0x84f   : > { %p2334_p2 = pneg %p2333_p7 }
 0x851   : > { %2695 = dma.done.wait (%p2334_p2), %s1908_s1, 128  }
 0x852   : > { %2697 = vsyncadd (%p2334_p2), %s1908_s1, 4294967168  ;;  %s3447_s24 = sld [smem:[#allocation26_spill]]  ;;  %s3449_s21 = smov %s2704_s22 }
 0x853   : > { %s3448_s19 = sld [smem:[#allocation28_spill]]  ;;  %s3450_s22 = smov %s2708_s23 }
 0x858   : > { %p37_p0 = scmp.ge.s32.totalorder %s3447_s24, 4  }
 0x859   : > { %s3451_s23 = smov %s3448_s19 }
 0x85a   :  { %39 = sbr.rel (!%p37_p0) target bundleno = 25 (0x19), region = 182 }
 0x85f   :  { %1913 = vsyncpa [#allocation3], 1 }
 0x860   :  { %1915 = vsyncpa [#allocation3 + $0x1], 1 }
 0x861   :  { %1916 = vsyncpa [#allocation6], 1 }
 0x862   :  { %1918 = vsyncpa [#allocation6 + $0x1], 1 }
 0x863   :  { %1919 = vsyncpa [#allocation9], 1 }
 0x864   :  { %1921 = vsyncpa [#allocation9 + $0x1], 1 }
 0x865   :  { %1922 = vsyncpa [#allocation12], 1 }
 0x866   :  { %1923 = vsyncpa [#allocation15], 1 }
 0x867   :  { %1924 = vsyncpa [#allocation4], 1 }
 0x868   :  { %1926 = vsyncpa [#allocation4 + $0x1], 1 }

</bundles_post_ra>
